<compile_context>
chip_gen: v5e
topology: v5e:2x2
jax: 0.10.0
libtpu: 0.0.40
codegen_flags: <defaults>
</compile_context>

<pallas_src>
import functools

import jax
import jax.numpy as jnp
from jax.experimental import pallas as pl
from jax.experimental.pallas import tpu as pltpu

LANE = 128   # TPU lane width; all channel axes zero-padded to this.
K = 7        # conv kernel size of the ResNet block
PAD = 3      # (K - 1) // 2


# --------------------------------------------------------------------------
# Fused whole-network kernel: all residual blocks + max-pool + linear head.
# --------------------------------------------------------------------------
def resnet_kernel(*refs, N, L0, strides, n_blocks):
    """refs layout:
         refs[0]                       x        (N, L0, 128) f32
         refs[1+6i : 7+6i]             block i: w1 (K,128,128) bf16, b1 (1,128) f32,
                                                w2 (K,128,128) bf16, b2 (1,128) f32,
                                                wd (128,128)  bf16,  bd (1,128) f32
         refs[1+6B], refs[2+6B]        fcw (128,128) bf16, fcb (1,128) f32
         refs[3+6B]                    o_ref (N, 128) f32           (output)
         refs[4+6B]                    scr   (N, L0+2*PAD, 128) f32 (scratch)
    """
    x_ref = refs[0]
    fcw_ref = refs[1 + 6 * n_blocks]
    fcb_ref = refs[2 + 6 * n_blocks]
    o_ref = refs[3 + 6 * n_blocks]
    scr_ref = refs[4 + 6 * n_blocks]

    f32 = jnp.float32
    bf16 = jnp.bfloat16

    def fill_pad(val3d, lin):
        """Write (N, lin, 128) f32 into the shared scratch with zeroed halos."""
        zero = jnp.zeros((N, PAD, LANE), f32)
        scr_ref[:, 0:PAD, :] = zero
        scr_ref[:, PAD + lin:PAD + lin + PAD, :] = zero
        scr_ref[:, PAD:PAD + lin, :] = val3d

    def conv_taps(w_ref, lout, stride, want_center):
        """k=7 conv by per-tap accumulation; taps read from the padded scratch.
        Returns ((N*lout, 128) f32 accumulator, centre tap (bf16) or None)."""
        acc = None
        center = None
        for k in range(K):
            if stride == 1:
                tap = scr_ref[:, k:k + lout, :]
            else:
                # in-kernel striding: sublane-strided load (no selection matmul)
                tap = scr_ref[:, pl.ds(k, lout, stride=stride), :]
            tap = tap.reshape(N * lout, LANE).astype(bf16)
            part = jnp.dot(tap, w_ref[k], preferred_element_type=f32)
            acc = part if acc is None else acc + part
            if want_center and k == PAD:
                center = tap   # == the strided 1x1-downsample input rows
        return acc, center

    cur = x_ref[...]                       # (N, L, 128) f32, padded lanes == 0
    length = L0
    for i in range(n_blocks):
        w1_ref, b1_ref, w2_ref, b2_ref, wd_ref, bd_ref = \
            refs[1 + 6 * i: 7 + 6 * i]
        stride = strides[i]
        lo = (length - 1) // stride + 1    # PyTorch output-length formula

        # conv1 (k=7, stride) + folded BN1 + ReLU -------------------------
        fill_pad(cur, length)
        acc1, center = conv_taps(w1_ref, lo, stride, want_center=True)
        h1 = jnp.maximum(acc1 + b1_ref[...], 0.0)          # (N*lo, 128) f32

        # downsample shortcut: 1x1 strided conv + folded BN ----------------
        identity = jnp.dot(center, wd_ref[...], preferred_element_type=f32)
        identity = identity + bd_ref[...]

        # conv2 (k=7, stride 1) + folded BN2 -------------------------------
        fill_pad(h1.reshape(N, lo, LANE), lo)
        acc2, _ = conv_taps(w2_ref, lo, 1, want_center=False)
        h2 = acc2 + b2_ref[...]

        # residual add + ReLU ----------------------------------------------
        cur = jnp.maximum(h2 + identity, 0.0).reshape(N, lo, LANE)
        length = lo

    # Head: AdaptiveMaxPool1d(1) -> Flatten -> Dropout(eval) -> Linear ------
    # TODO(synk): nn.Dropout is stochastic in training mode; eval-mode identity here.
    # Padded lanes of `cur` are exactly 0 (post-ReLU, zero-padded weights), and
    # fc_w's padded rows are 0, so pooling / matmul over all 128 lanes is exact.
    pooled = jnp.max(cur, axis=1)                           # (N, 128)
    logits = jnp.dot(pooled.astype(bf16), fcw_ref[...],
                     preferred_element_type=f32) + fcb_ref[...]
    o_ref[...] = logits.astype(o_ref.dtype)


# --------------------------------------------------------------------------
# Host-side (one-time) parameter preparation: BN folded into weights/bias.
# --------------------------------------------------------------------------
def fold_bn(gamma, beta, running_mean, running_var, eps=1e-5):
    scale = gamma / jnp.sqrt(running_var + eps)
    bias = beta - running_mean * scale
    return scale, bias


def prep_conv7_weight(w_oik, scale):
    """PyTorch (Cout, Cin, 7) weight * per-Cout BN scale -> (7, 128, 128) bf16."""
    cout, cin, k = w_oik.shape
    assert cin <= LANE and cout <= LANE and k == K
    w = jnp.transpose(w_oik, (2, 1, 0)) * scale[None, None, :]   # (K, Cin, Cout)
    w = jnp.pad(w, ((0, 0), (0, LANE - cin), (0, LANE - cout)))
    return w.astype(jnp.bfloat16)


def prep_conv1_weight(w_oik, scale):
    """PyTorch (Cout, Cin, 1) weight * per-Cout BN scale -> (128, 128) bf16."""
    cout, cin, _ = w_oik.shape
    w = w_oik[:, :, 0].T * scale[None, :]                        # (Cin, Cout)
    w = jnp.pad(w, ((0, LANE - cin), (0, LANE - cout)))
    return w.astype(jnp.bfloat16)


def prep_row(v):
    """(C,) per-channel vector -> lane-padded (1, 128) f32 row."""
    return jnp.pad(v, (0, LANE - v.shape[0])).reshape(1, LANE).astype(jnp.float32)


def prep_fc_weight(w_oc):
    """PyTorch Linear (classes, depth) -> lane-padded (128, 128) bf16."""
    classes, depth = w_oc.shape
    return jnp.pad(w_oc.T, ((0, LANE - depth), (0, LANE - classes))).astype(jnp.bfloat16)


def init_resnet_params(key, inplanes, planes, strides, classes):
    params = {"blocks": [], "classes": classes}
    depth = inplanes
    for pln, strd in zip(planes, strides):
        key, k1, k2, k3 = jax.random.split(key, 4)
        # PyTorch-shaped weights, re-laid-out (and BN-folded) once here.
        w1 = 0.1 * jax.random.normal(k1, (pln, depth, 7), jnp.float32)
        w2 = 0.1 * jax.random.normal(k2, (pln, pln, 7), jnp.float32)
        wd = 0.1 * jax.random.normal(k3, (pln, depth, 1), jnp.float32)
        # BatchNorm1d inference defaults: gamma=1, beta=0, mean=0, var=1.
        ones = jnp.ones((pln,), jnp.float32)
        zeros = jnp.zeros((pln,), jnp.float32)
        s1, b1 = fold_bn(ones, zeros, zeros, ones)
        s2, b2 = fold_bn(ones, zeros, zeros, ones)
        sd, bd = fold_bn(ones, zeros, zeros, ones)
        params["blocks"].append({
            "w1": prep_conv7_weight(w1, s1), "b1": prep_row(b1),
            "w2": prep_conv7_weight(w2, s2), "b2": prep_row(b2),
            "wd": prep_conv1_weight(wd, sd), "bd": prep_row(bd),
            "stride": strd,
        })
        depth = pln
    key, kw, kb = jax.random.split(key, 3)
    fc_w = 0.1 * jax.random.normal(kw, (classes, depth), jnp.float32)
    fc_b = 0.1 * jax.random.normal(kb, (classes,), jnp.float32)
    params["head"] = {"fc_w": prep_fc_weight(fc_w), "fc_b": prep_row(fc_b)}
    return params


# --------------------------------------------------------------------------
# Model forward: ONE pallas_call for the whole network.
# --------------------------------------------------------------------------
def resnet_forward(x_ncl, params):
    """x_ncl: (N, C_in, L) like the PyTorch module.  Returns (N, classes)."""
    N, cin, L = x_ncl.shape
    blocks = params["blocks"]
    n_blocks = len(blocks)

    # One-time boundary layout op: NCL -> lane-padded (N, L, 128) NLC slab so
    # channels sit on the lane (fast) axis inside the kernel.
    x = jnp.transpose(x_ncl, (0, 2, 1)).astype(jnp.float32)
    x = jnp.pad(x, ((0, 0), (0, 0), (0, LANE - cin)))

    inputs = [x]
    for blk in blocks:
        inputs += [blk["w1"], blk["b1"], blk["w2"], blk["b2"],
                   blk["wd"], blk["bd"]]
    inputs += [params["head"]["fc_w"], params["head"]["fc_b"]]

    kernel = functools.partial(
        resnet_kernel, N=N, L0=L,
        strides=tuple(blk["stride"] for blk in blocks), n_blocks=n_blocks)

    out = pl.pallas_call(
        kernel,
        out_shape=jax.ShapeDtypeStruct((N, LANE), jnp.float32),
        scratch_shapes=[
            # shared padded-input scratch, reused by every conv (lengths only
            # shrink across blocks); f32 so strided tap loads are plain
            # 32-bit sublane-strided loads.
            pltpu.VMEM((N, L + 2 * PAD, LANE), jnp.float32),
        ],
    )(*inputs)
    return out[:, :params["classes"]]


# --------------------------------------------------------------------------
if __name__ == "__main__":
    inplanes = 4
    planes = [8, 16]
    strides = [1, 2]
    classes = 3
    N, L = 2, 16

    key = jax.random.PRNGKey(0)
    key, kx = jax.random.split(key)
    x = jax.random.normal(kx, (N, inplanes, L), jnp.float32)   # NCL like PyTorch

    params = init_resnet_params(key, inplanes, planes, strides, classes)

    out = resnet_forward(x, params)
    out = jax.block_until_ready(out)
    assert out.shape == (N, classes), out.shape
    print("KERNEL_OK")
</pallas_src>

<mosaic_0001>
module attributes {stable_mosaic.version = 11 : i64} {
  func.func @resnet_kernel(%arg0: memref<2x16x128xf32, #tpu.memory_space<vmem>>, %arg1: memref<7x128x128xbf16, #tpu.memory_space<vmem>>, %arg2: memref<1x128xf32, #tpu.memory_space<vmem>>, %arg3: memref<7x128x128xbf16, #tpu.memory_space<vmem>>, %arg4: memref<1x128xf32, #tpu.memory_space<vmem>>, %arg5: memref<128x128xbf16, #tpu.memory_space<vmem>>, %arg6: memref<1x128xf32, #tpu.memory_space<vmem>>, %arg7: memref<7x128x128xbf16, #tpu.memory_space<vmem>>, %arg8: memref<1x128xf32, #tpu.memory_space<vmem>>, %arg9: memref<7x128x128xbf16, #tpu.memory_space<vmem>>, %arg10: memref<1x128xf32, #tpu.memory_space<vmem>>, %arg11: memref<128x128xbf16, #tpu.memory_space<vmem>>, %arg12: memref<1x128xf32, #tpu.memory_space<vmem>>, %arg13: memref<128x128xbf16, #tpu.memory_space<vmem>>, %arg14: memref<1x128xf32, #tpu.memory_space<vmem>>, %arg15: memref<2x128xf32, #tpu.memory_space<vmem>>, %arg16: memref<2x22x128xf32, #tpu.memory_space<vmem>>) attributes {dimension_semantics = [], scalar_prefetch = 0 : i64, scratch_operands = 1 : i64, tpu.core_type = #tpu.core_type<tc>} {
    %c0 = arith.constant 0 : index
    %c0_0 = arith.constant 0 : index
    %c0_1 = arith.constant 0 : index
    %0 = vector.load %arg0[%c0, %c0_0, %c0_1] : memref<2x16x128xf32, #tpu.memory_space<vmem>>, vector<2x16x128xf32>
    %cst = arith.constant 0.000000e+00 : f32
    %1 = vector.broadcast %cst : f32 to vector<2x3x128xf32>
    %c0_2 = arith.constant 0 : index
    %c0_3 = arith.constant 0 : index
    %c0_4 = arith.constant 0 : index
    %2 = vector.load %arg16[%c0_2, %c0_3, %c0_4] : memref<2x22x128xf32, #tpu.memory_space<vmem>>, vector<2x3x128xf32>
    tpu.vector_store %arg16[%c0_2, %c0_3, %c0_4], %1 {strides = array<i32>} : memref<2x22x128xf32, #tpu.memory_space<vmem>>, vector<2x3x128xf32>,
    %c0_5 = arith.constant 0 : index
    %c19 = arith.constant 19 : index
    %c0_6 = arith.constant 0 : index
    %3 = vector.load %arg16[%c0_5, %c19, %c0_6] : memref<2x22x128xf32, #tpu.memory_space<vmem>>, vector<2x3x128xf32>
    tpu.vector_store %arg16[%c0_5, %c19, %c0_6], %1 {strides = array<i32>} : memref<2x22x128xf32, #tpu.memory_space<vmem>>, vector<2x3x128xf32>,
    %c0_7 = arith.constant 0 : index
    %c3 = arith.constant 3 : index
    %c0_8 = arith.constant 0 : index
    %4 = vector.load %arg16[%c0_7, %c3, %c0_8] : memref<2x22x128xf32, #tpu.memory_space<vmem>>, vector<2x16x128xf32>
    tpu.vector_store %arg16[%c0_7, %c3, %c0_8], %0 {strides = array<i32>} : memref<2x22x128xf32, #tpu.memory_space<vmem>>, vector<2x16x128xf32>,
    %c0_9 = arith.constant 0 : index
    %c0_10 = arith.constant 0 : index
    %c0_11 = arith.constant 0 : index
    %5 = vector.load %arg16[%c0_9, %c0_10, %c0_11] : memref<2x22x128xf32, #tpu.memory_space<vmem>>, vector<2x16x128xf32>
    %6 = vector.shape_cast %5 : vector<2x16x128xf32> to vector<32x128xf32>
    %7 = arith.truncf %6 : vector<32x128xf32> to vector<32x128xbf16>
    %c0_12 = arith.constant 0 : index
    %c0_13 = arith.constant 0 : index
    %c0_14 = arith.constant 0 : index
    %8 = vector.load %arg1[%c0_12, %c0_13, %c0_14] : memref<7x128x128xbf16, #tpu.memory_space<vmem>>, vector<1x128x128xbf16>
    %9 = vector.shape_cast %8 : vector<1x128x128xbf16> to vector<128x128xbf16>
    %cst_15 = arith.constant dense<0.000000e+00> : vector<32x128xf32>
    %10 = tpu.matmul %7, %9, %cst_15 {dimension_numbers = #tpu.dot_dimension_numbers<[1], [0], [0], [1], [0, 0, 1, 1], [], []>} : vector<32x128xbf16>, vector<128x128xbf16>, vector<32x128xf32> -> vector<32x128xf32>
    %c0_16 = arith.constant 0 : index
    %c1 = arith.constant 1 : index
    %c0_17 = arith.constant 0 : index
    %11 = vector.load %arg16[%c0_16, %c1, %c0_17] : memref<2x22x128xf32, #tpu.memory_space<vmem>>, vector<2x16x128xf32>
    %12 = vector.shape_cast %11 : vector<2x16x128xf32> to vector<32x128xf32>
    %13 = arith.truncf %12 : vector<32x128xf32> to vector<32x128xbf16>
    %c1_18 = arith.constant 1 : index
    %c0_19 = arith.constant 0 : index
    %c0_20 = arith.constant 0 : index
    %14 = vector.load %arg1[%c1_18, %c0_19, %c0_20] : memref<7x128x128xbf16, #tpu.memory_space<vmem>>, vector<1x128x128xbf16>
    %15 = vector.shape_cast %14 : vector<1x128x128xbf16> to vector<128x128xbf16>
    %cst_21 = arith.constant dense<0.000000e+00> : vector<32x128xf32>
    %16 = tpu.matmul %13, %15, %cst_21 {dimension_numbers = #tpu.dot_dimension_numbers<[1], [0], [0], [1], [0, 0, 1, 1], [], []>} : vector<32x128xbf16>, vector<128x128xbf16>, vector<32x128xf32> -> vector<32x128xf32>
    %17 = arith.addf %10, %16 : vector<32x128xf32>
    %c0_22 = arith.constant 0 : index
    %c2 = arith.constant 2 : index
    %c0_23 = arith.constant 0 : index
    %18 = vector.load %arg16[%c0_22, %c2, %c0_23] : memref<2x22x128xf32, #tpu.memory_space<vmem>>, vector<2x16x128xf32>
    %19 = vector.shape_cast %18 : vector<2x16x128xf32> to vector<32x128xf32>
    %20 = arith.truncf %19 : vector<32x128xf32> to vector<32x128xbf16>
    %c2_24 = arith.constant 2 : index
    %c0_25 = arith.constant 0 : index
    %c0_26 = arith.constant 0 : index
    %21 = vector.load %arg1[%c2_24, %c0_25, %c0_26] : memref<7x128x128xbf16, #tpu.memory_space<vmem>>, vector<1x128x128xbf16>
    %22 = vector.shape_cast %21 : vector<1x128x128xbf16> to vector<128x128xbf16>
    %cst_27 = arith.constant dense<0.000000e+00> : vector<32x128xf32>
    %23 = tpu.matmul %20, %22, %cst_27 {dimension_numbers = #tpu.dot_dimension_numbers<[1], [0], [0], [1], [0, 0, 1, 1], [], []>} : vector<32x128xbf16>, vector<128x128xbf16>, vector<32x128xf32> -> vector<32x128xf32>
    %24 = arith.addf %17, %23 : vector<32x128xf32>
    %c0_28 = arith.constant 0 : index
    %c3_29 = arith.constant 3 : index
    %c0_30 = arith.constant 0 : index
    %25 = vector.load %arg16[%c0_28, %c3_29, %c0_30] : memref<2x22x128xf32, #tpu.memory_space<vmem>>, vector<2x16x128xf32>
    %26 = vector.shape_cast %25 : vector<2x16x128xf32> to vector<32x128xf32>
    %27 = arith.truncf %26 : vector<32x128xf32> to vector<32x128xbf16>
    %c3_31 = arith.constant 3 : index
    %c0_32 = arith.constant 0 : index
    %c0_33 = arith.constant 0 : index
    %28 = vector.load %arg1[%c3_31, %c0_32, %c0_33] : memref<7x128x128xbf16, #tpu.memory_space<vmem>>, vector<1x128x128xbf16>
    %29 = vector.shape_cast %28 : vector<1x128x128xbf16> to vector<128x128xbf16>
    %cst_34 = arith.constant dense<0.000000e+00> : vector<32x128xf32>
    %30 = tpu.matmul %27, %29, %cst_34 {dimension_numbers = #tpu.dot_dimension_numbers<[1], [0], [0], [1], [0, 0, 1, 1], [], []>} : vector<32x128xbf16>, vector<128x128xbf16>, vector<32x128xf32> -> vector<32x128xf32>
    %31 = arith.addf %24, %30 : vector<32x128xf32>
    %c0_35 = arith.constant 0 : index
    %c4 = arith.constant 4 : index
    %c0_36 = arith.constant 0 : index
    %32 = vector.load %arg16[%c0_35, %c4, %c0_36] : memref<2x22x128xf32, #tpu.memory_space<vmem>>, vector<2x16x128xf32>
    %33 = vector.shape_cast %32 : vector<2x16x128xf32> to vector<32x128xf32>
    %34 = arith.truncf %33 : vector<32x128xf32> to vector<32x128xbf16>
    %c4_37 = arith.constant 4 : index
    %c0_38 = arith.constant 0 : index
    %c0_39 = arith.constant 0 : index
    %35 = vector.load %arg1[%c4_37, %c0_38, %c0_39] : memref<7x128x128xbf16, #tpu.memory_space<vmem>>, vector<1x128x128xbf16>
    %36 = vector.shape_cast %35 : vector<1x128x128xbf16> to vector<128x128xbf16>
    %cst_40 = arith.constant dense<0.000000e+00> : vector<32x128xf32>
    %37 = tpu.matmul %34, %36, %cst_40 {dimension_numbers = #tpu.dot_dimension_numbers<[1], [0], [0], [1], [0, 0, 1, 1], [], []>} : vector<32x128xbf16>, vector<128x128xbf16>, vector<32x128xf32> -> vector<32x128xf32>
    %38 = arith.addf %31, %37 : vector<32x128xf32>
    %c0_41 = arith.constant 0 : index
    %c5 = arith.constant 5 : index
    %c0_42 = arith.constant 0 : index
    %39 = vector.load %arg16[%c0_41, %c5, %c0_42] : memref<2x22x128xf32, #tpu.memory_space<vmem>>, vector<2x16x128xf32>
    %40 = vector.shape_cast %39 : vector<2x16x128xf32> to vector<32x128xf32>
    %41 = arith.truncf %40 : vector<32x128xf32> to vector<32x128xbf16>
    %c5_43 = arith.constant 5 : index
    %c0_44 = arith.constant 0 : index
    %c0_45 = arith.constant 0 : index
    %42 = vector.load %arg1[%c5_43, %c0_44, %c0_45] : memref<7x128x128xbf16, #tpu.memory_space<vmem>>, vector<1x128x128xbf16>
    %43 = vector.shape_cast %42 : vector<1x128x128xbf16> to vector<128x128xbf16>
    %cst_46 = arith.constant dense<0.000000e+00> : vector<32x128xf32>
    %44 = tpu.matmul %41, %43, %cst_46 {dimension_numbers = #tpu.dot_dimension_numbers<[1], [0], [0], [1], [0, 0, 1, 1], [], []>} : vector<32x128xbf16>, vector<128x128xbf16>, vector<32x128xf32> -> vector<32x128xf32>
    %45 = arith.addf %38, %44 : vector<32x128xf32>
    %c0_47 = arith.constant 0 : index
    %c6 = arith.constant 6 : index
    %c0_48 = arith.constant 0 : index
    %46 = vector.load %arg16[%c0_47, %c6, %c0_48] : memref<2x22x128xf32, #tpu.memory_space<vmem>>, vector<2x16x128xf32>
    %47 = vector.shape_cast %46 : vector<2x16x128xf32> to vector<32x128xf32>
    %48 = arith.truncf %47 : vector<32x128xf32> to vector<32x128xbf16>
    %c6_49 = arith.constant 6 : index
    %c0_50 = arith.constant 0 : index
    %c0_51 = arith.constant 0 : index
    %49 = vector.load %arg1[%c6_49, %c0_50, %c0_51] : memref<7x128x128xbf16, #tpu.memory_space<vmem>>, vector<1x128x128xbf16>
    %50 = vector.shape_cast %49 : vector<1x128x128xbf16> to vector<128x128xbf16>
    %cst_52 = arith.constant dense<0.000000e+00> : vector<32x128xf32>
    %51 = tpu.matmul %48, %50, %cst_52 {dimension_numbers = #tpu.dot_dimension_numbers<[1], [0], [0], [1], [0, 0, 1, 1], [], []>} : vector<32x128xbf16>, vector<128x128xbf16>, vector<32x128xf32> -> vector<32x128xf32>
    %52 = arith.addf %45, %51 : vector<32x128xf32>
    %c0_53 = arith.constant 0 : index
    %c0_54 = arith.constant 0 : index
    %53 = vector.load %arg2[%c0_53, %c0_54] : memref<1x128xf32, #tpu.memory_space<vmem>>, vector<1x128xf32>
    %54 = vector.broadcast %53 : vector<1x128xf32> to vector<32x128xf32>
    %55 = arith.addf %52, %54 : vector<32x128xf32>
    %cst_55 = arith.constant 0.000000e+00 : f32
    %56 = vector.broadcast %cst_55 : f32 to vector<32x128xf32>
    %57 = arith.maximumf %55, %56 : vector<32x128xf32>
    %c0_56 = arith.constant 0 : index
    %c0_57 = arith.constant 0 : index
    %58 = vector.load %arg5[%c0_56, %c0_57] : memref<128x128xbf16, #tpu.memory_space<vmem>>, vector<128x128xbf16>
    %cst_58 = arith.constant dense<0.000000e+00> : vector<32x128xf32>
    %59 = tpu.matmul %27, %58, %cst_58 {dimension_numbers = #tpu.dot_dimension_numbers<[1], [0], [0], [1], [0, 0, 1, 1], [], []>} : vector<32x128xbf16>, vector<128x128xbf16>, vector<32x128xf32> -> vector<32x128xf32>
    %c0_59 = arith.constant 0 : index
    %c0_60 = arith.constant 0 : index
    %60 = vector.load %arg6[%c0_59, %c0_60] : memref<1x128xf32, #tpu.memory_space<vmem>>, vector<1x128xf32>
    %61 = vector.broadcast %60 : vector<1x128xf32> to vector<32x128xf32>
    %62 = arith.addf %59, %61 : vector<32x128xf32>
    %63 = vector.shape_cast %57 : vector<32x128xf32> to vector<2x16x128xf32>
    %cst_61 = arith.constant 0.000000e+00 : f32
    %64 = vector.broadcast %cst_61 : f32 to vector<2x3x128xf32>
    %c0_62 = arith.constant 0 : index
    %c0_63 = arith.constant 0 : index
    %c0_64 = arith.constant 0 : index
    %65 = vector.load %arg16[%c0_62, %c0_63, %c0_64] : memref<2x22x128xf32, #tpu.memory_space<vmem>>, vector<2x3x128xf32>
    tpu.vector_store %arg16[%c0_62, %c0_63, %c0_64], %64 {strides = array<i32>} : memref<2x22x128xf32, #tpu.memory_space<vmem>>, vector<2x3x128xf32>,
    %c0_65 = arith.constant 0 : index
    %c19_66 = arith.constant 19 : index
    %c0_67 = arith.constant 0 : index
    %66 = vector.load %arg16[%c0_65, %c19_66, %c0_67] : memref<2x22x128xf32, #tpu.memory_space<vmem>>, vector<2x3x128xf32>
    tpu.vector_store %arg16[%c0_65, %c19_66, %c0_67], %64 {strides = array<i32>} : memref<2x22x128xf32, #tpu.memory_space<vmem>>, vector<2x3x128xf32>,
    %c0_68 = arith.constant 0 : index
    %c3_69 = arith.constant 3 : index
    %c0_70 = arith.constant 0 : index
    %67 = vector.load %arg16[%c0_68, %c3_69, %c0_70] : memref<2x22x128xf32, #tpu.memory_space<vmem>>, vector<2x16x128xf32>
    tpu.vector_store %arg16[%c0_68, %c3_69, %c0_70], %63 {strides = array<i32>} : memref<2x22x128xf32, #tpu.memory_space<vmem>>, vector<2x16x128xf32>,
    %c0_71 = arith.constant 0 : index
    %c0_72 = arith.constant 0 : index
    %c0_73 = arith.constant 0 : index
    %68 = vector.load %arg16[%c0_71, %c0_72, %c0_73] : memref<2x22x128xf32, #tpu.memory_space<vmem>>, vector<2x16x128xf32>
    %69 = vector.shape_cast %68 : vector<2x16x128xf32> to vector<32x128xf32>
    %70 = arith.truncf %69 : vector<32x128xf32> to vector<32x128xbf16>
    %c0_74 = arith.constant 0 : index
    %c0_75 = arith.constant 0 : index
    %c0_76 = arith.constant 0 : index
    %71 = vector.load %arg3[%c0_74, %c0_75, %c0_76] : memref<7x128x128xbf16, #tpu.memory_space<vmem>>, vector<1x128x128xbf16>
    %72 = vector.shape_cast %71 : vector<1x128x128xbf16> to vector<128x128xbf16>
    %cst_77 = arith.constant dense<0.000000e+00> : vector<32x128xf32>
    %73 = tpu.matmul %70, %72, %cst_77 {dimension_numbers = #tpu.dot_dimension_numbers<[1], [0], [0], [1], [0, 0, 1, 1], [], []>} : vector<32x128xbf16>, vector<128x128xbf16>, vector<32x128xf32> -> vector<32x128xf32>
    %c0_78 = arith.constant 0 : index
    %c1_79 = arith.constant 1 : index
    %c0_80 = arith.constant 0 : index
    %74 = vector.load %arg16[%c0_78, %c1_79, %c0_80] : memref<2x22x128xf32, #tpu.memory_space<vmem>>, vector<2x16x128xf32>
    %75 = vector.shape_cast %74 : vector<2x16x128xf32> to vector<32x128xf32>
    %76 = arith.truncf %75 : vector<32x128xf32> to vector<32x128xbf16>
    %c1_81 = arith.constant 1 : index
    %c0_82 = arith.constant 0 : index
    %c0_83 = arith.constant 0 : index
    %77 = vector.load %arg3[%c1_81, %c0_82, %c0_83] : memref<7x128x128xbf16, #tpu.memory_space<vmem>>, vector<1x128x128xbf16>
    %78 = vector.shape_cast %77 : vector<1x128x128xbf16> to vector<128x128xbf16>
    %cst_84 = arith.constant dense<0.000000e+00> : vector<32x128xf32>
    %79 = tpu.matmul %76, %78, %cst_84 {dimension_numbers = #tpu.dot_dimension_numbers<[1], [0], [0], [1], [0, 0, 1, 1], [], []>} : vector<32x128xbf16>, vector<128x128xbf16>, vector<32x128xf32> -> vector<32x128xf32>
    %80 = arith.addf %73, %79 : vector<32x128xf32>
    %c0_85 = arith.constant 0 : index
    %c2_86 = arith.constant 2 : index
    %c0_87 = arith.constant 0 : index
    %81 = vector.load %arg16[%c0_85, %c2_86, %c0_87] : memref<2x22x128xf32, #tpu.memory_space<vmem>>, vector<2x16x128xf32>
    %82 = vector.shape_cast %81 : vector<2x16x128xf32> to vector<32x128xf32>
    %83 = arith.truncf %82 : vector<32x128xf32> to vector<32x128xbf16>
    %c2_88 = arith.constant 2 : index
    %c0_89 = arith.constant 0 : index
    %c0_90 = arith.constant 0 : index
    %84 = vector.load %arg3[%c2_88, %c0_89, %c0_90] : memref<7x128x128xbf16, #tpu.memory_space<vmem>>, vector<1x128x128xbf16>
    %85 = vector.shape_cast %84 : vector<1x128x128xbf16> to vector<128x128xbf16>
    %cst_91 = arith.constant dense<0.000000e+00> : vector<32x128xf32>
    %86 = tpu.matmul %83, %85, %cst_91 {dimension_numbers = #tpu.dot_dimension_numbers<[1], [0], [0], [1], [0, 0, 1, 1], [], []>} : vector<32x128xbf16>, vector<128x128xbf16>, vector<32x128xf32> -> vector<32x128xf32>
    %87 = arith.addf %80, %86 : vector<32x128xf32>
    %c0_92 = arith.constant 0 : index
    %c3_93 = arith.constant 3 : index
    %c0_94 = arith.constant 0 : index
    %88 = vector.load %arg16[%c0_92, %c3_93, %c0_94] : memref<2x22x128xf32, #tpu.memory_space<vmem>>, vector<2x16x128xf32>
    %89 = vector.shape_cast %88 : vector<2x16x128xf32> to vector<32x128xf32>
    %90 = arith.truncf %89 : vector<32x128xf32> to vector<32x128xbf16>
    %c3_95 = arith.constant 3 : index
    %c0_96 = arith.constant 0 : index
    %c0_97 = arith.constant 0 : index
    %91 = vector.load %arg3[%c3_95, %c0_96, %c0_97] : memref<7x128x128xbf16, #tpu.memory_space<vmem>>, vector<1x128x128xbf16>
    %92 = vector.shape_cast %91 : vector<1x128x128xbf16> to vector<128x128xbf16>
    %cst_98 = arith.constant dense<0.000000e+00> : vector<32x128xf32>
    %93 = tpu.matmul %90, %92, %cst_98 {dimension_numbers = #tpu.dot_dimension_numbers<[1], [0], [0], [1], [0, 0, 1, 1], [], []>} : vector<32x128xbf16>, vector<128x128xbf16>, vector<32x128xf32> -> vector<32x128xf32>
    %94 = arith.addf %87, %93 : vector<32x128xf32>
    %c0_99 = arith.constant 0 : index
    %c4_100 = arith.constant 4 : index
    %c0_101 = arith.constant 0 : index
    %95 = vector.load %arg16[%c0_99, %c4_100, %c0_101] : memref<2x22x128xf32, #tpu.memory_space<vmem>>, vector<2x16x128xf32>
    %96 = vector.shape_cast %95 : vector<2x16x128xf32> to vector<32x128xf32>
    %97 = arith.truncf %96 : vector<32x128xf32> to vector<32x128xbf16>
    %c4_102 = arith.constant 4 : index
    %c0_103 = arith.constant 0 : index
    %c0_104 = arith.constant 0 : index
    %98 = vector.load %arg3[%c4_102, %c0_103, %c0_104] : memref<7x128x128xbf16, #tpu.memory_space<vmem>>, vector<1x128x128xbf16>
    %99 = vector.shape_cast %98 : vector<1x128x128xbf16> to vector<128x128xbf16>
    %cst_105 = arith.constant dense<0.000000e+00> : vector<32x128xf32>
    %100 = tpu.matmul %97, %99, %cst_105 {dimension_numbers = #tpu.dot_dimension_numbers<[1], [0], [0], [1], [0, 0, 1, 1], [], []>} : vector<32x128xbf16>, vector<128x128xbf16>, vector<32x128xf32> -> vector<32x128xf32>
    %101 = arith.addf %94, %100 : vector<32x128xf32>
    %c0_106 = arith.constant 0 : index
    %c5_107 = arith.constant 5 : index
    %c0_108 = arith.constant 0 : index
    %102 = vector.load %arg16[%c0_106, %c5_107, %c0_108] : memref<2x22x128xf32, #tpu.memory_space<vmem>>, vector<2x16x128xf32>
    %103 = vector.shape_cast %102 : vector<2x16x128xf32> to vector<32x128xf32>
    %104 = arith.truncf %103 : vector<32x128xf32> to vector<32x128xbf16>
    %c5_109 = arith.constant 5 : index
    %c0_110 = arith.constant 0 : index
    %c0_111 = arith.constant 0 : index
    %105 = vector.load %arg3[%c5_109, %c0_110, %c0_111] : memref<7x128x128xbf16, #tpu.memory_space<vmem>>, vector<1x128x128xbf16>
    %106 = vector.shape_cast %105 : vector<1x128x128xbf16> to vector<128x128xbf16>
    %cst_112 = arith.constant dense<0.000000e+00> : vector<32x128xf32>
    %107 = tpu.matmul %104, %106, %cst_112 {dimension_numbers = #tpu.dot_dimension_numbers<[1], [0], [0], [1], [0, 0, 1, 1], [], []>} : vector<32x128xbf16>, vector<128x128xbf16>, vector<32x128xf32> -> vector<32x128xf32>
    %108 = arith.addf %101, %107 : vector<32x128xf32>
    %c0_113 = arith.constant 0 : index
    %c6_114 = arith.constant 6 : index
    %c0_115 = arith.constant 0 : index
    %109 = vector.load %arg16[%c0_113, %c6_114, %c0_115] : memref<2x22x128xf32, #tpu.memory_space<vmem>>, vector<2x16x128xf32>
    %110 = vector.shape_cast %109 : vector<2x16x128xf32> to vector<32x128xf32>
    %111 = arith.truncf %110 : vector<32x128xf32> to vector<32x128xbf16>
    %c6_116 = arith.constant 6 : index
    %c0_117 = arith.constant 0 : index
    %c0_118 = arith.constant 0 : index
    %112 = vector.load %arg3[%c6_116, %c0_117, %c0_118] : memref<7x128x128xbf16, #tpu.memory_space<vmem>>, vector<1x128x128xbf16>
    %113 = vector.shape_cast %112 : vector<1x128x128xbf16> to vector<128x128xbf16>
    %cst_119 = arith.constant dense<0.000000e+00> : vector<32x128xf32>
    %114 = tpu.matmul %111, %113, %cst_119 {dimension_numbers = #tpu.dot_dimension_numbers<[1], [0], [0], [1], [0, 0, 1, 1], [], []>} : vector<32x128xbf16>, vector<128x128xbf16>, vector<32x128xf32> -> vector<32x128xf32>
    %115 = arith.addf %108, %114 : vector<32x128xf32>
    %c0_120 = arith.constant 0 : index
    %c0_121 = arith.constant 0 : index
    %116 = vector.load %arg4[%c0_120, %c0_121] : memref<1x128xf32, #tpu.memory_space<vmem>>, vector<1x128xf32>
    %117 = vector.broadcast %116 : vector<1x128xf32> to vector<32x128xf32>
    %118 = arith.addf %115, %117 : vector<32x128xf32>
    %119 = arith.addf %118, %62 : vector<32x128xf32>
    %cst_122 = arith.constant 0.000000e+00 : f32
    %120 = vector.broadcast %cst_122 : f32 to vector<32x128xf32>
    %121 = arith.maximumf %119, %120 : vector<32x128xf32>
    %122 = vector.shape_cast %121 : vector<32x128xf32> to vector<2x16x128xf32>
    %cst_123 = arith.constant 0.000000e+00 : f32
    %123 = vector.broadcast %cst_123 : f32 to vector<2x3x128xf32>
    %c0_124 = arith.constant 0 : index
    %c0_125 = arith.constant 0 : index
    %c0_126 = arith.constant 0 : index
    %124 = vector.load %arg16[%c0_124, %c0_125, %c0_126] : memref<2x22x128xf32, #tpu.memory_space<vmem>>, vector<2x3x128xf32>
    tpu.vector_store %arg16[%c0_124, %c0_125, %c0_126], %123 {strides = array<i32>} : memref<2x22x128xf32, #tpu.memory_space<vmem>>, vector<2x3x128xf32>,
    %c0_127 = arith.constant 0 : index
    %c19_128 = arith.constant 19 : index
    %c0_129 = arith.constant 0 : index
    %125 = vector.load %arg16[%c0_127, %c19_128, %c0_129] : memref<2x22x128xf32, #tpu.memory_space<vmem>>, vector<2x3x128xf32>
    tpu.vector_store %arg16[%c0_127, %c19_128, %c0_129], %123 {strides = array<i32>} : memref<2x22x128xf32, #tpu.memory_space<vmem>>, vector<2x3x128xf32>,
    %c0_130 = arith.constant 0 : index
    %c3_131 = arith.constant 3 : index
    %c0_132 = arith.constant 0 : index
    %126 = vector.load %arg16[%c0_130, %c3_131, %c0_132] : memref<2x22x128xf32, #tpu.memory_space<vmem>>, vector<2x16x128xf32>
    tpu.vector_store %arg16[%c0_130, %c3_131, %c0_132], %122 {strides = array<i32>} : memref<2x22x128xf32, #tpu.memory_space<vmem>>, vector<2x16x128xf32>,
    %c0_133 = arith.constant 0 : index
    %c0_134 = arith.constant 0 : index
    %c0_135 = arith.constant 0 : index
    %127 = tpu.strided_load %arg16[%c0_133, %c0_134, %c0_135] {strides = array<i32: 1, 2, 1>} : memref<2x22x128xf32, #tpu.memory_space<vmem>>, vector<2x8x128xf32>
    %128 = vector.shape_cast %127 : vector<2x8x128xf32> to vector<16x128xf32>
    %129 = arith.truncf %128 : vector<16x128xf32> to vector<16x128xbf16>
    %c0_136 = arith.constant 0 : index
    %c0_137 = arith.constant 0 : index
    %c0_138 = arith.constant 0 : index
    %130 = vector.load %arg7[%c0_136, %c0_137, %c0_138] : memref<7x128x128xbf16, #tpu.memory_space<vmem>>, vector<1x128x128xbf16>
    %131 = vector.shape_cast %130 : vector<1x128x128xbf16> to vector<128x128xbf16>
    %cst_139 = arith.constant dense<0.000000e+00> : vector<16x128xf32>
    %132 = tpu.matmul %129, %131, %cst_139 {dimension_numbers = #tpu.dot_dimension_numbers<[1], [0], [0], [1], [0, 0, 1, 1], [], []>} : vector<16x128xbf16>, vector<128x128xbf16>, vector<16x128xf32> -> vector<16x128xf32>
    %c0_140 = arith.constant 0 : index
    %c1_141 = arith.constant 1 : index
    %c0_142 = arith.constant 0 : index
    %133 = tpu.strided_load %arg16[%c0_140, %c1_141, %c0_142] {strides = array<i32: 1, 2, 1>} : memref<2x22x128xf32, #tpu.memory_space<vmem>>, vector<2x8x128xf32>
    %134 = vector.shape_cast %133 : vector<2x8x128xf32> to vector<16x128xf32>
    %135 = arith.truncf %134 : vector<16x128xf32> to vector<16x128xbf16>
    %c1_143 = arith.constant 1 : index
    %c0_144 = arith.constant 0 : index
    %c0_145 = arith.constant 0 : index
    %136 = vector.load %arg7[%c1_143, %c0_144, %c0_145] : memref<7x128x128xbf16, #tpu.memory_space<vmem>>, vector<1x128x128xbf16>
    %137 = vector.shape_cast %136 : vector<1x128x128xbf16> to vector<128x128xbf16>
    %cst_146 = arith.constant dense<0.000000e+00> : vector<16x128xf32>
    %138 = tpu.matmul %135, %137, %cst_146 {dimension_numbers = #tpu.dot_dimension_numbers<[1], [0], [0], [1], [0, 0, 1, 1], [], []>} : vector<16x128xbf16>, vector<128x128xbf16>, vector<16x128xf32> -> vector<16x128xf32>
    %139 = arith.addf %132, %138 : vector<16x128xf32>
    %c0_147 = arith.constant 0 : index
    %c2_148 = arith.constant 2 : index
    %c0_149 = arith.constant 0 : index
    %140 = tpu.strided_load %arg16[%c0_147, %c2_148, %c0_149] {strides = array<i32: 1, 2, 1>} : memref<2x22x128xf32, #tpu.memory_space<vmem>>, vector<2x8x128xf32>
    %141 = vector.shape_cast %140 : vector<2x8x128xf32> to vector<16x128xf32>
    %142 = arith.truncf %141 : vector<16x128xf32> to vector<16x128xbf16>
    %c2_150 = arith.constant 2 : index
    %c0_151 = arith.constant 0 : index
    %c0_152 = arith.constant 0 : index
    %143 = vector.load %arg7[%c2_150, %c0_151, %c0_152] : memref<7x128x128xbf16, #tpu.memory_space<vmem>>, vector<1x128x128xbf16>
    %144 = vector.shape_cast %143 : vector<1x128x128xbf16> to vector<128x128xbf16>
    %cst_153 = arith.constant dense<0.000000e+00> : vector<16x128xf32>
    %145 = tpu.matmul %142, %144, %cst_153 {dimension_numbers = #tpu.dot_dimension_numbers<[1], [0], [0], [1], [0, 0, 1, 1], [], []>} : vector<16x128xbf16>, vector<128x128xbf16>, vector<16x128xf32> -> vector<16x128xf32>
    %146 = arith.addf %139, %145 : vector<16x128xf32>
    %c0_154 = arith.constant 0 : index
    %c3_155 = arith.constant 3 : index
    %c0_156 = arith.constant 0 : index
    %147 = tpu.strided_load %arg16[%c0_154, %c3_155, %c0_156] {strides = array<i32: 1, 2, 1>} : memref<2x22x128xf32, #tpu.memory_space<vmem>>, vector<2x8x128xf32>
    %148 = vector.shape_cast %147 : vector<2x8x128xf32> to vector<16x128xf32>
    %149 = arith.truncf %148 : vector<16x128xf32> to vector<16x128xbf16>
    %c3_157 = arith.constant 3 : index
    %c0_158 = arith.constant 0 : index
    %c0_159 = arith.constant 0 : index
    %150 = vector.load %arg7[%c3_157, %c0_158, %c0_159] : memref<7x128x128xbf16, #tpu.memory_space<vmem>>, vector<1x128x128xbf16>
    %151 = vector.shape_cast %150 : vector<1x128x128xbf16> to vector<128x128xbf16>
    %cst_160 = arith.constant dense<0.000000e+00> : vector<16x128xf32>
    %152 = tpu.matmul %149, %151, %cst_160 {dimension_numbers = #tpu.dot_dimension_numbers<[1], [0], [0], [1], [0, 0, 1, 1], [], []>} : vector<16x128xbf16>, vector<128x128xbf16>, vector<16x128xf32> -> vector<16x128xf32>
    %153 = arith.addf %146, %152 : vector<16x128xf32>
    %c0_161 = arith.constant 0 : index
    %c4_162 = arith.constant 4 : index
    %c0_163 = arith.constant 0 : index
    %154 = tpu.strided_load %arg16[%c0_161, %c4_162, %c0_163] {strides = array<i32: 1, 2, 1>} : memref<2x22x128xf32, #tpu.memory_space<vmem>>, vector<2x8x128xf32>
    %155 = vector.shape_cast %154 : vector<2x8x128xf32> to vector<16x128xf32>
    %156 = arith.truncf %155 : vector<16x128xf32> to vector<16x128xbf16>
    %c4_164 = arith.constant 4 : index
    %c0_165 = arith.constant 0 : index
    %c0_166 = arith.constant 0 : index
    %157 = vector.load %arg7[%c4_164, %c0_165, %c0_166] : memref<7x128x128xbf16, #tpu.memory_space<vmem>>, vector<1x128x128xbf16>
    %158 = vector.shape_cast %157 : vector<1x128x128xbf16> to vector<128x128xbf16>
    %cst_167 = arith.constant dense<0.000000e+00> : vector<16x128xf32>
    %159 = tpu.matmul %156, %158, %cst_167 {dimension_numbers = #tpu.dot_dimension_numbers<[1], [0], [0], [1], [0, 0, 1, 1], [], []>} : vector<16x128xbf16>, vector<128x128xbf16>, vector<16x128xf32> -> vector<16x128xf32>
    %160 = arith.addf %153, %159 : vector<16x128xf32>
    %c0_168 = arith.constant 0 : index
    %c5_169 = arith.constant 5 : index
    %c0_170 = arith.constant 0 : index
    %161 = tpu.strided_load %arg16[%c0_168, %c5_169, %c0_170] {strides = array<i32: 1, 2, 1>} : memref<2x22x128xf32, #tpu.memory_space<vmem>>, vector<2x8x128xf32>
    %162 = vector.shape_cast %161 : vector<2x8x128xf32> to vector<16x128xf32>
    %163 = arith.truncf %162 : vector<16x128xf32> to vector<16x128xbf16>
    %c5_171 = arith.constant 5 : index
    %c0_172 = arith.constant 0 : index
    %c0_173 = arith.constant 0 : index
    %164 = vector.load %arg7[%c5_171, %c0_172, %c0_173] : memref<7x128x128xbf16, #tpu.memory_space<vmem>>, vector<1x128x128xbf16>
    %165 = vector.shape_cast %164 : vector<1x128x128xbf16> to vector<128x128xbf16>
    %cst_174 = arith.constant dense<0.000000e+00> : vector<16x128xf32>
    %166 = tpu.matmul %163, %165, %cst_174 {dimension_numbers = #tpu.dot_dimension_numbers<[1], [0], [0], [1], [0, 0, 1, 1], [], []>} : vector<16x128xbf16>, vector<128x128xbf16>, vector<16x128xf32> -> vector<16x128xf32>
    %167 = arith.addf %160, %166 : vector<16x128xf32>
    %c0_175 = arith.constant 0 : index
    %c6_176 = arith.constant 6 : index
    %c0_177 = arith.constant 0 : index
    %168 = tpu.strided_load %arg16[%c0_175, %c6_176, %c0_177] {strides = array<i32: 1, 2, 1>} : memref<2x22x128xf32, #tpu.memory_space<vmem>>, vector<2x8x128xf32>
    %169 = vector.shape_cast %168 : vector<2x8x128xf32> to vector<16x128xf32>
    %170 = arith.truncf %169 : vector<16x128xf32> to vector<16x128xbf16>
    %c6_178 = arith.constant 6 : index
    %c0_179 = arith.constant 0 : index
    %c0_180 = arith.constant 0 : index
    %171 = vector.load %arg7[%c6_178, %c0_179, %c0_180] : memref<7x128x128xbf16, #tpu.memory_space<vmem>>, vector<1x128x128xbf16>
    %172 = vector.shape_cast %171 : vector<1x128x128xbf16> to vector<128x128xbf16>
    %cst_181 = arith.constant dense<0.000000e+00> : vector<16x128xf32>
    %173 = tpu.matmul %170, %172, %cst_181 {dimension_numbers = #tpu.dot_dimension_numbers<[1], [0], [0], [1], [0, 0, 1, 1], [], []>} : vector<16x128xbf16>, vector<128x128xbf16>, vector<16x128xf32> -> vector<16x128xf32>
    %174 = arith.addf %167, %173 : vector<16x128xf32>
    %c0_182 = arith.constant 0 : index
    %c0_183 = arith.constant 0 : index
    %175 = vector.load %arg8[%c0_182, %c0_183] : memref<1x128xf32, #tpu.memory_space<vmem>>, vector<1x128xf32>
    %176 = vector.broadcast %175 : vector<1x128xf32> to vector<16x128xf32>
    %177 = arith.addf %174, %176 : vector<16x128xf32>
    %cst_184 = arith.constant 0.000000e+00 : f32
    %178 = vector.broadcast %cst_184 : f32 to vector<16x128xf32>
    %179 = arith.maximumf %177, %178 : vector<16x128xf32>
    %c0_185 = arith.constant 0 : index
    %c0_186 = arith.constant 0 : index
    %180 = vector.load %arg11[%c0_185, %c0_186] : memref<128x128xbf16, #tpu.memory_space<vmem>>, vector<128x128xbf16>
    %cst_187 = arith.constant dense<0.000000e+00> : vector<16x128xf32>
    %181 = tpu.matmul %149, %180, %cst_187 {dimension_numbers = #tpu.dot_dimension_numbers<[1], [0], [0], [1], [0, 0, 1, 1], [], []>} : vector<16x128xbf16>, vector<128x128xbf16>, vector<16x128xf32> -> vector<16x128xf32>
    %c0_188 = arith.constant 0 : index
    %c0_189 = arith.constant 0 : index
    %182 = vector.load %arg12[%c0_188, %c0_189] : memref<1x128xf32, #tpu.memory_space<vmem>>, vector<1x128xf32>
    %183 = vector.broadcast %182 : vector<1x128xf32> to vector<16x128xf32>
    %184 = arith.addf %181, %183 : vector<16x128xf32>
    %185 = vector.shape_cast %179 : vector<16x128xf32> to vector<2x8x128xf32>
    %cst_190 = arith.constant 0.000000e+00 : f32
    %186 = vector.broadcast %cst_190 : f32 to vector<2x3x128xf32>
    %c0_191 = arith.constant 0 : index
    %c0_192 = arith.constant 0 : index
    %c0_193 = arith.constant 0 : index
    %187 = vector.load %arg16[%c0_191, %c0_192, %c0_193] : memref<2x22x128xf32, #tpu.memory_space<vmem>>, vector<2x3x128xf32>
    tpu.vector_store %arg16[%c0_191, %c0_192, %c0_193], %186 {strides = array<i32>} : memref<2x22x128xf32, #tpu.memory_space<vmem>>, vector<2x3x128xf32>,
    %c0_194 = arith.constant 0 : index
    %c11 = arith.constant 11 : index
    %c0_195 = arith.constant 0 : index
    %188 = vector.load %arg16[%c0_194, %c11, %c0_195] : memref<2x22x128xf32, #tpu.memory_space<vmem>>, vector<2x3x128xf32>
    tpu.vector_store %arg16[%c0_194, %c11, %c0_195], %186 {strides = array<i32>} : memref<2x22x128xf32, #tpu.memory_space<vmem>>, vector<2x3x128xf32>,
    %c0_196 = arith.constant 0 : index
    %c3_197 = arith.constant 3 : index
    %c0_198 = arith.constant 0 : index
    %189 = vector.load %arg16[%c0_196, %c3_197, %c0_198] : memref<2x22x128xf32, #tpu.memory_space<vmem>>, vector<2x8x128xf32>
    tpu.vector_store %arg16[%c0_196, %c3_197, %c0_198], %185 {strides = array<i32>} : memref<2x22x128xf32, #tpu.memory_space<vmem>>, vector<2x8x128xf32>,
    %c0_199 = arith.constant 0 : index
    %c0_200 = arith.constant 0 : index
    %c0_201 = arith.constant 0 : index
    %190 = vector.load %arg16[%c0_199, %c0_200, %c0_201] : memref<2x22x128xf32, #tpu.memory_space<vmem>>, vector<2x8x128xf32>
    %191 = vector.shape_cast %190 : vector<2x8x128xf32> to vector<16x128xf32>
    %192 = arith.truncf %191 : vector<16x128xf32> to vector<16x128xbf16>
    %c0_202 = arith.constant 0 : index
    %c0_203 = arith.constant 0 : index
    %c0_204 = arith.constant 0 : index
    %193 = vector.load %arg9[%c0_202, %c0_203, %c0_204] : memref<7x128x128xbf16, #tpu.memory_space<vmem>>, vector<1x128x128xbf16>
    %194 = vector.shape_cast %193 : vector<1x128x128xbf16> to vector<128x128xbf16>
    %cst_205 = arith.constant dense<0.000000e+00> : vector<16x128xf32>
    %195 = tpu.matmul %192, %194, %cst_205 {dimension_numbers = #tpu.dot_dimension_numbers<[1], [0], [0], [1], [0, 0, 1, 1], [], []>} : vector<16x128xbf16>, vector<128x128xbf16>, vector<16x128xf32> -> vector<16x128xf32>
    %c0_206 = arith.constant 0 : index
    %c1_207 = arith.constant 1 : index
    %c0_208 = arith.constant 0 : index
    %196 = vector.load %arg16[%c0_206, %c1_207, %c0_208] : memref<2x22x128xf32, #tpu.memory_space<vmem>>, vector<2x8x128xf32>
    %197 = vector.shape_cast %196 : vector<2x8x128xf32> to vector<16x128xf32>
    %198 = arith.truncf %197 : vector<16x128xf32> to vector<16x128xbf16>
    %c1_209 = arith.constant 1 : index
    %c0_210 = arith.constant 0 : index
    %c0_211 = arith.constant 0 : index
    %199 = vector.load %arg9[%c1_209, %c0_210, %c0_211] : memref<7x128x128xbf16, #tpu.memory_space<vmem>>, vector<1x128x128xbf16>
    %200 = vector.shape_cast %199 : vector<1x128x128xbf16> to vector<128x128xbf16>
    %cst_212 = arith.constant dense<0.000000e+00> : vector<16x128xf32>
    %201 = tpu.matmul %198, %200, %cst_212 {dimension_numbers = #tpu.dot_dimension_numbers<[1], [0], [0], [1], [0, 0, 1, 1], [], []>} : vector<16x128xbf16>, vector<128x128xbf16>, vector<16x128xf32> -> vector<16x128xf32>
    %202 = arith.addf %195, %201 : vector<16x128xf32>
    %c0_213 = arith.constant 0 : index
    %c2_214 = arith.constant 2 : index
    %c0_215 = arith.constant 0 : index
    %203 = vector.load %arg16[%c0_213, %c2_214, %c0_215] : memref<2x22x128xf32, #tpu.memory_space<vmem>>, vector<2x8x128xf32>
    %204 = vector.shape_cast %203 : vector<2x8x128xf32> to vector<16x128xf32>
    %205 = arith.truncf %204 : vector<16x128xf32> to vector<16x128xbf16>
    %c2_216 = arith.constant 2 : index
    %c0_217 = arith.constant 0 : index
    %c0_218 = arith.constant 0 : index
    %206 = vector.load %arg9[%c2_216, %c0_217, %c0_218] : memref<7x128x128xbf16, #tpu.memory_space<vmem>>, vector<1x128x128xbf16>
    %207 = vector.shape_cast %206 : vector<1x128x128xbf16> to vector<128x128xbf16>
    %cst_219 = arith.constant dense<0.000000e+00> : vector<16x128xf32>
    %208 = tpu.matmul %205, %207, %cst_219 {dimension_numbers = #tpu.dot_dimension_numbers<[1], [0], [0], [1], [0, 0, 1, 1], [], []>} : vector<16x128xbf16>, vector<128x128xbf16>, vector<16x128xf32> -> vector<16x128xf32>
    %209 = arith.addf %202, %208 : vector<16x128xf32>
    %c0_220 = arith.constant 0 : index
    %c3_221 = arith.constant 3 : index
    %c0_222 = arith.constant 0 : index
    %210 = vector.load %arg16[%c0_220, %c3_221, %c0_222] : memref<2x22x128xf32, #tpu.memory_space<vmem>>, vector<2x8x128xf32>
    %211 = vector.shape_cast %210 : vector<2x8x128xf32> to vector<16x128xf32>
    %212 = arith.truncf %211 : vector<16x128xf32> to vector<16x128xbf16>
    %c3_223 = arith.constant 3 : index
    %c0_224 = arith.constant 0 : index
    %c0_225 = arith.constant 0 : index
    %213 = vector.load %arg9[%c3_223, %c0_224, %c0_225] : memref<7x128x128xbf16, #tpu.memory_space<vmem>>, vector<1x128x128xbf16>
    %214 = vector.shape_cast %213 : vector<1x128x128xbf16> to vector<128x128xbf16>
    %cst_226 = arith.constant dense<0.000000e+00> : vector<16x128xf32>
    %215 = tpu.matmul %212, %214, %cst_226 {dimension_numbers = #tpu.dot_dimension_numbers<[1], [0], [0], [1], [0, 0, 1, 1], [], []>} : vector<16x128xbf16>, vector<128x128xbf16>, vector<16x128xf32> -> vector<16x128xf32>
    %216 = arith.addf %209, %215 : vector<16x128xf32>
    %c0_227 = arith.constant 0 : index
    %c4_228 = arith.constant 4 : index
    %c0_229 = arith.constant 0 : index
    %217 = vector.load %arg16[%c0_227, %c4_228, %c0_229] : memref<2x22x128xf32, #tpu.memory_space<vmem>>, vector<2x8x128xf32>
    %218 = vector.shape_cast %217 : vector<2x8x128xf32> to vector<16x128xf32>
    %219 = arith.truncf %218 : vector<16x128xf32> to vector<16x128xbf16>
    %c4_230 = arith.constant 4 : index
    %c0_231 = arith.constant 0 : index
    %c0_232 = arith.constant 0 : index
    %220 = vector.load %arg9[%c4_230, %c0_231, %c0_232] : memref<7x128x128xbf16, #tpu.memory_space<vmem>>, vector<1x128x128xbf16>
    %221 = vector.shape_cast %220 : vector<1x128x128xbf16> to vector<128x128xbf16>
    %cst_233 = arith.constant dense<0.000000e+00> : vector<16x128xf32>
    %222 = tpu.matmul %219, %221, %cst_233 {dimension_numbers = #tpu.dot_dimension_numbers<[1], [0], [0], [1], [0, 0, 1, 1], [], []>} : vector<16x128xbf16>, vector<128x128xbf16>, vector<16x128xf32> -> vector<16x128xf32>
    %223 = arith.addf %216, %222 : vector<16x128xf32>
    %c0_234 = arith.constant 0 : index
    %c5_235 = arith.constant 5 : index
    %c0_236 = arith.constant 0 : index
    %224 = vector.load %arg16[%c0_234, %c5_235, %c0_236] : memref<2x22x128xf32, #tpu.memory_space<vmem>>, vector<2x8x128xf32>
    %225 = vector.shape_cast %224 : vector<2x8x128xf32> to vector<16x128xf32>
    %226 = arith.truncf %225 : vector<16x128xf32> to vector<16x128xbf16>
    %c5_237 = arith.constant 5 : index
    %c0_238 = arith.constant 0 : index
    %c0_239 = arith.constant 0 : index
    %227 = vector.load %arg9[%c5_237, %c0_238, %c0_239] : memref<7x128x128xbf16, #tpu.memory_space<vmem>>, vector<1x128x128xbf16>
    %228 = vector.shape_cast %227 : vector<1x128x128xbf16> to vector<128x128xbf16>
    %cst_240 = arith.constant dense<0.000000e+00> : vector<16x128xf32>
    %229 = tpu.matmul %226, %228, %cst_240 {dimension_numbers = #tpu.dot_dimension_numbers<[1], [0], [0], [1], [0, 0, 1, 1], [], []>} : vector<16x128xbf16>, vector<128x128xbf16>, vector<16x128xf32> -> vector<16x128xf32>
    %230 = arith.addf %223, %229 : vector<16x128xf32>
    %c0_241 = arith.constant 0 : index
    %c6_242 = arith.constant 6 : index
    %c0_243 = arith.constant 0 : index
    %231 = vector.load %arg16[%c0_241, %c6_242, %c0_243] : memref<2x22x128xf32, #tpu.memory_space<vmem>>, vector<2x8x128xf32>
    %232 = vector.shape_cast %231 : vector<2x8x128xf32> to vector<16x128xf32>
    %233 = arith.truncf %232 : vector<16x128xf32> to vector<16x128xbf16>
    %c6_244 = arith.constant 6 : index
    %c0_245 = arith.constant 0 : index
    %c0_246 = arith.constant 0 : index
    %234 = vector.load %arg9[%c6_244, %c0_245, %c0_246] : memref<7x128x128xbf16, #tpu.memory_space<vmem>>, vector<1x128x128xbf16>
    %235 = vector.shape_cast %234 : vector<1x128x128xbf16> to vector<128x128xbf16>
    %cst_247 = arith.constant dense<0.000000e+00> : vector<16x128xf32>
    %236 = tpu.matmul %233, %235, %cst_247 {dimension_numbers = #tpu.dot_dimension_numbers<[1], [0], [0], [1], [0, 0, 1, 1], [], []>} : vector<16x128xbf16>, vector<128x128xbf16>, vector<16x128xf32> -> vector<16x128xf32>
    %237 = arith.addf %230, %236 : vector<16x128xf32>
    %c0_248 = arith.constant 0 : index
    %c0_249 = arith.constant 0 : index
    %238 = vector.load %arg10[%c0_248, %c0_249] : memref<1x128xf32, #tpu.memory_space<vmem>>, vector<1x128xf32>
    %239 = vector.broadcast %238 : vector<1x128xf32> to vector<16x128xf32>
    %240 = arith.addf %237, %239 : vector<16x128xf32>
    %241 = arith.addf %240, %184 : vector<16x128xf32>
    %cst_250 = arith.constant 0.000000e+00 : f32
    %242 = vector.broadcast %cst_250 : f32 to vector<16x128xf32>
    %243 = arith.maximumf %241, %242 : vector<16x128xf32>
    %244 = vector.shape_cast %243 : vector<16x128xf32> to vector<2x8x128xf32>
    %cst_251 = arith.constant dense<0xFF800000> : vector<2x128xf32>
    %245 = vector.multi_reduction <maximumf>, %244, %cst_251 [1] : vector<2x8x128xf32> to vector<2x128xf32>
    %246 = arith.truncf %245 : vector<2x128xf32> to vector<2x128xbf16>
    %c0_252 = arith.constant 0 : index
    %c0_253 = arith.constant 0 : index
    %247 = vector.load %arg13[%c0_252, %c0_253] : memref<128x128xbf16, #tpu.memory_space<vmem>>, vector<128x128xbf16>
    %cst_254 = arith.constant dense<0.000000e+00> : vector<2x128xf32>
    %248 = tpu.matmul %246, %247, %cst_254 {dimension_numbers = #tpu.dot_dimension_numbers<[1], [0], [0], [1], [0, 0, 1, 1], [], []>} : vector<2x128xbf16>, vector<128x128xbf16>, vector<2x128xf32> -> vector<2x128xf32>
    %c0_255 = arith.constant 0 : index
    %c0_256 = arith.constant 0 : index
    %249 = vector.load %arg14[%c0_255, %c0_256] : memref<1x128xf32, #tpu.memory_space<vmem>>, vector<1x128xf32>
    %250 = vector.broadcast %249 : vector<1x128xf32> to vector<2x128xf32>
    %251 = arith.addf %248, %250 : vector<2x128xf32>
    %c0_257 = arith.constant 0 : index
    %c0_258 = arith.constant 0 : index
    %252 = vector.load %arg15[%c0_257, %c0_258] : memref<2x128xf32, #tpu.memory_space<vmem>>, vector<2x128xf32>
    tpu.vector_store %arg15[%c0_257, %c0_258], %251 {strides = array<i32>} : memref<2x128xf32, #tpu.memory_space<vmem>>, vector<2x128xf32>,
    return
  }
}

</mosaic_0001>

<bundles_post_ra>
// kernel: tpu_custom_call.1
= control target key start
LH: loop header
LB: loop body
LE: loop exit
PB: predicated region body
PF: predicated region fallthrough
CT: control target
= control target key end

     0   :  { %20 = vsyncpa [#allocation4], 0  ;;  %s4799_s0 = inlined_call_operand.hbm [shape: f32[2,16,128], index: 0, kind: input, shape index: {}]   ;;  %s4800_s1 = inlined_call_operand.hbm [shape: bf16[7,128,128], index: 1, kind: input, shape index: {}]   ;;  %s4801_s2 = inlined_call_operand.vmem [shape: f32[1,128], index: 2, kind: input, shape index: {}]   ;;  %s4802_s3 = inlined_call_operand.hbm [shape: bf16[7,128,128], index: 3, kind: input, shape index: {}]   ;;  %s4803_s4 = inlined_call_operand.vmem [shape: f32[1,128], index: 4, kind: input, shape index: {}]   ;;  %s4804_s5 = inlined_call_operand.hbm [shape: bf16[128,128], index: 5, kind: input, shape index: {}]   ;;  %s4805_s6 = inlined_call_operand.vmem [shape: f32[1,128], index: 6, kind: input, shape index: {}]   ;;  %s4806_s7 = inlined_call_operand.hbm [shape: bf16[7,128,128], index: 7, kind: input, shape index: {}]   ;;  %s4807_s8 = inlined_call_operand.vmem [shape: f32[1,128], index: 8, kind: input, shape index: {}]   ;;  %s4808_s9 = inlined_call_operand.hbm [shape: bf16[7,128,128], index: 9, kind: input, shape index: {}]   ;;  %s4809_s10 = inlined_call_operand.vmem [shape: f32[1,128], index: 10, kind: input, shape index: {}]   ;;  %s4810_s11 = inlined_call_operand.hbm [shape: bf16[128,128], index: 11, kind: input, shape index: {}]   ;;  %s4811_s12 = inlined_call_operand.vmem [shape: f32[1,128], index: 12, kind: input, shape index: {}]   ;;  %s4812_s13 = inlined_call_operand.hbm [shape: bf16[128,128], index: 13, kind: input, shape index: {}]   ;;  %s4813_s14 = inlined_call_operand.vmem [shape: f32[1,128], index: 14, kind: input, shape index: {}]   ;;  %s4814_s15 = inlined_call_operand.hbm [shape: f32[2,128], index: 15, kind: output, shape index: {}]  }
   0x1   :  { %21 = vsyncpa [#allocation7], 0 }
   0x2   :  { %22 = vsyncpa [#allocation10], 0 }
   0x3   :  { %23 = vsyncpa [#allocation13], 0 }
   0x4   :  { %24 = vsyncpa [#allocation16], 0  ;;  %s43_s20 = sshll.u32 %s4800_s1, 4  ;;  %s44_s20 = int_to_ptr.hbm [resolvable:$true] %s43_s20 }
   0x5   :  { %25 = vsyncpa [#allocation5], 0  ;;  %s4516_s21 = smov [#allocation6]   ;;  %s73_s25 = sshll.u32 %s4804_s5, 4  ;;  %s74_s25 = int_to_ptr.hbm [resolvable:$true] %s73_s25 }
   0x6   :  { %s45_s22 = sshll.u32 %s4516_s21, 4  ;;  %s4517_s26 = smov 64   ;;  %s46_s22 = int_to_ptr.vmem [resolvable:$true] %s45_s22 }
   0x7   :  { %s4518_s27 = smov 4   ;;  %s4519_s28 = smov [#allocation9]  }
   0x8   :  { %51 = dma.hbm_to_vmem [thread:$0]  %s44_s20, 7168, %s46_s22, [#allocation7], %s4517_s26, %s4517_s26, %s4518_s27  }
   0x9   :  { %s75_s29 = sshll.u32 %s4519_s28, 4  ;;  %s103_s16 = sshll.u32 %s4808_s9, 4  ;;  %s76_s29 = int_to_ptr.vmem [resolvable:$true] %s75_s29  ;;  %s104_s16 = int_to_ptr.hbm [resolvable:$true] %s103_s16 }
   0xa   :  { %81 = dma.hbm_to_vmem [thread:$0]  %s74_s25, 1024, %s76_s29, [#allocation10], %s4517_s26, %s4517_s26, %s4518_s27  }
   0xb   :  { %s30_s18 = sshll.u32 %s4799_s0, 4  ;;  %s4520_s19 = smov [#allocation12]   ;;  %s31_s18 = int_to_ptr.hbm [resolvable:$true] %s30_s18 }
   0xc   :  { %s105_s21 = sshll.u32 %s4520_s19, 4  ;;  %s4521_s20 = smov [#allocation3]   ;;  %s106_s21 = int_to_ptr.vmem [resolvable:$true] %s105_s21 }
   0xd   :  { %111 = dma.hbm_to_vmem [thread:$0]  %s104_s16, 7168, %s106_s21, [#allocation13], %s4517_s26, %s4517_s26, %s4518_s27  }
   0xe   :  { %s32_s9 = sshll.u32 %s4521_s20, 4  ;;  %s4522_s22 = smov 128   ;;  %s33_s9 = int_to_ptr.vmem [resolvable:$true] %s32_s9 }
   0xf   :  { %s4523_s23 = smov 8   ;;  %s58_s28 = sshll.u32 %s4802_s3, 4  ;;  %s59_s28 = int_to_ptr.hbm [resolvable:$true] %s58_s28 }
  0x10   :  { %38 = dma.hbm_to_vmem [thread:$0]  %s31_s18, 512, %s33_s9, [#allocation4], %s4522_s22, %s4522_s22, %s4523_s23  }
  0x11   :  { %s4524_s0 = smov [#allocation8]   ;;  %s88_s5 = sshll.u32 %s4806_s7, 4  ;;  %s89_s5 = int_to_ptr.hbm [resolvable:$true] %s88_s5 }
  0x12   :  { %s60_s29 = sshll.u32 %s4524_s0, 4  ;;  %s4525_s16 = smov [#allocation11]   ;;  %s61_s29 = int_to_ptr.vmem [resolvable:$true] %s60_s29 }
  0x13   :  { %66 = dma.hbm_to_vmem [thread:$0]  %s59_s28, 7168, %s61_s29, [#allocation7], %s4517_s26, %s4517_s26, %s4518_s27  }
  0x14   :  { %s90_s17 = sshll.u32 %s4525_s16, 4  ;;  %s118_s21 = sshll.u32 %s4810_s11, 4  ;;  %s91_s17 = int_to_ptr.vmem [resolvable:$true] %s90_s17  ;;  %s119_s21 = int_to_ptr.hbm [resolvable:$true] %s118_s21 }
  0x15   :  { %96 = dma.hbm_to_vmem [thread:$0]  %s89_s5, 7168, %s91_s17, [#allocation10], %s4517_s26, %s4517_s26, %s4518_s27  }
  0x16   :  { %s133_s7 = sshll.u32 %s4812_s13, 4  ;;  %s4526_s9 = smov [#allocation14]   ;;  %s134_s7 = int_to_ptr.hbm [resolvable:$true] %s133_s7 }
  0x17   :  { %s120_s22 = sshll.u32 %s4526_s9, 4  ;;  %s4527_s23 = smov [#allocation15]   ;;  %s121_s22 = int_to_ptr.vmem [resolvable:$true] %s120_s22 }
  0x18   :  { %126 = dma.hbm_to_vmem [thread:$0]  %s119_s21, 1024, %s121_s22, [#allocation13], %s4517_s26, %s4517_s26, %s4518_s27  }
  0x19   :  { %s135_s11 = sshll.u32 %s4527_s23, 4  ;;  %s136_s11 = int_to_ptr.vmem [resolvable:$true] %s135_s11 }
  0x1a   :  { %141 = dma.hbm_to_vmem [thread:$0]  %s134_s7, 1024, %s136_s11, [#allocation16], %s4517_s26, %s4517_s26, %s4518_s27  }
  0x1b   :  { %4504 = dma.done.wait [#allocation4], 512  }
  0x1c   :  { %4505 = vsyncadd [#allocation4], 4294966784 }
  0x1d   :  { %4506 = dma.done.wait [#allocation7], 14336  }
  0x1e   :  { %4507 = vsyncadd [#allocation7], 4294952960 }
  0x1f   :  { %4508 = dma.done.wait [#allocation10], 8192  }
  0x20   :  { %4509 = vsyncadd [#allocation10], 4294959104 }
  0x21   :  { %4510 = dma.done.wait [#allocation13], 8192  }
  0x22   :  { %4511 = vsyncadd [#allocation13], 4294959104 }
  0x23   :  { %4512 = dma.done.wait [#allocation16], 1024  }
  0x24   :  { %4513 = vsyncadd [#allocation16], 4294966272  ;;  %v4528_v0 = vmov 0.0   ;;  %v4034_v1 = vld [vmem:[#allocation6 + $0x78] sm:$0xff]  ;;  %v4033_v5 = vld [vmem:[#allocation6 + $0x70] sm:$0xff]  ;;  %vm2940_vm0 = vcmask 1041409  }
  0x25   :  { %180 = vst [vmem:[#allocation2] sm:$0x7] %v4528_v0  ;;  %v4026_v2 = vld [vmem:[#allocation6 + $0x38] sm:$0xff]  ;;  %281 = vmatpush.bf16.msra.mxu0 %v4034_v1  ;;  %v4025_v6 = vld [vmem:[#allocation6 + $0x30] sm:$0xff]  ;;  %v4032_v9 = vld [vmem:[#allocation6 + $0x68] sm:$0xff]  ;;  %s4529_s30 = smov [#allocation17]  }
  0x26   :  { %181 = vst [vmem:[#allocation2 + $0x18] sm:$0x7] %v4528_v0  ;;  %v4042_v3 = vld [vmem:[#allocation6 + $0xb8] sm:$0xff]  ;;  %348 = vmatpush.bf16.msra.mxu1 %v4026_v2  ;;  %v4041_v7 = vld [vmem:[#allocation6 + $0xb0] sm:$0xff]  ;;  %v4024_v10 = vld [vmem:[#allocation6 + $0x28] sm:$0xff]  ;;  %s3011_s1 = sshll.u32 %s4529_s30, 4  ;;  %s3012_s1 = int_to_ptr.vmem [resolvable:$true] %s3011_s1 }
  0x27   :  { %182 = vst [vmem:[#allocation2 + $0x13] sm:$0x7] %v4528_v0  ;;  %v4050_v4 = vld [vmem:[#allocation6 + $0xf8] sm:$0xff]  ;;  %438 = vmatpush.bf16.msra.mxu2 %v4042_v3  ;;  %v4049_v8 = vld [vmem:[#allocation6 + $0xf0] sm:$0xff]  ;;  %v4040_v11 = vld [vmem:[#allocation6 + $0xa8] sm:$0xff]  ;;  %s3013_s17 = sshll.u32 %s4814_s15, 4  ;;  %s3014_s17 = int_to_ptr.hbm [resolvable:$true] %s3013_s17 }
  0x28   :  { %183 = vst [vmem:[#allocation2 + $0x2b] sm:$0x7] %v4528_v0  ;;  %532 = vmatpush.bf16.msra.mxu3 %v4050_v4  ;;  %v4048_v12 = vld [vmem:[#allocation6 + $0xe8] sm:$0xff]  ;;  %v4031_v13 = vld [vmem:[#allocation6 + $0x60] sm:$0xff]  ;;  %v4030_v19 = vld [vmem:[#allocation6 + $0x58] sm:$0xff] }
  0x29   :  { %282 = vmatpush.bf16.msra.mxu0 %v4033_v5  ;;  %v4023_v14 = vld [vmem:[#allocation6 + $0x20] sm:$0xff]  ;;  %v177_v18 = vld [vmem:[#allocation3 + $0x8] sm:$0xff]  ;;  %v4022_v20 = vld [vmem:[#allocation6 + $0x18] sm:$0xff] }
  0x2a   :  { %349 = vmatpush.bf16.msra.mxu1 %v4025_v6  ;;  %v4659_v15 = vld [vmem:[#allocation3] sm:$0xff]  ;;  %185 = vst [vmem:[#allocation2 + $0xb] sm:$0xff] %v177_v18  ;;  %v4038_v21 = vld [vmem:[#allocation6 + $0x98] sm:$0xff]  ;;  %v4662_v23 = vld [vmem:[#allocation3 + $0x10] sm:$0xff] }
  0x2b   :  { %439 = vmatpush.bf16.msra.mxu2 %v4041_v7  ;;  %v4039_v16 = vld [vmem:[#allocation6 + $0xa0] sm:$0xff]  ;;  %184 = vst [vmem:[#allocation2 + $0x3] sm:$0xff] %v4659_v15  ;;  %v4046_v22 = vld [vmem:[#allocation6 + $0xd8] sm:$0xff]  ;;  %v4029_v25 = vld [vmem:[#allocation6 + $0x50] sm:$0xff]  ;;  %v4677_v52 = vpack.c.bf16 %v177_v18, %v4659_v15 }
  0x2c   :  { %533 = vmatpush.bf16.msra.mxu3 %v4049_v8  ;;  %v4047_v17 = vld [vmem:[#allocation6 + $0xe0] sm:$0xff]  ;;  %v4664_v24 = vld [vmem:[#allocation3 + $0x18] sm:$0xff]  ;;  %186 = vst [vmem:[#allocation2 + $0x1b] sm:$0xff] %v4662_v23  ;;  %v4021_v26 = vld [vmem:[#allocation6 + $0x10] sm:$0xff] }
  0x2d   :  { %283 = vmatpush.bf16.msra.mxu0 %v4032_v9  ;;  %187 = vst [vmem:[#allocation2 + $0x23] sm:$0xff] %v4664_v24  ;;  %v4037_v30 = vld [vmem:[#allocation6 + $0x90] sm:$0xff]  ;;  %v4028_v32 = vld [vmem:[#allocation6 + $0x48] sm:$0xff]  ;;  %v4027_v39 = vld [vmem:[#allocation6 + $0x40] sm:$0xff] }
  0x2e   :  { %350 = vmatpush.bf16.msra.mxu1 %v4024_v10  ;;  %v4045_v31 = vld [vmem:[#allocation6 + $0xd0] sm:$0xff]  ;;  %v4020_v33 = vld [vmem:[#allocation6 + $0x8] sm:$0xff]  ;;  %v4019_v40 = vld [vmem:[#allocation6] sm:$0xff] }
  0x2f   :  { %440 = vmatpush.bf16.msra.mxu2 %v4040_v11  ;;  %v4036_v34 = vld [vmem:[#allocation6 + $0x88] sm:$0xff]  ;;  %v4035_v43 = vld [vmem:[#allocation6 + $0x80] sm:$0xff]  ;;  %v4074_v46 = vld [vmem:[#allocation6 + $0x1b8] sm:$0xff]  ;;  %v4692_v11 = vpack.c.bf16 %v4664_v24, %v4662_v23 }
  0x30   :  { %534 = vmatpush.bf16.msra.mxu3 %v4048_v12  ;;  %v4044_v35 = vld [vmem:[#allocation6 + $0xc8] sm:$0xff]  ;;  %v4043_v44 = vld [vmem:[#allocation6 + $0xc0] sm:$0xff]  ;;  %v4058_v47 = vld [vmem:[#allocation6 + $0x138] sm:$0xff] }
  0x31   :  { %284 = vmatpush.bf16.msra.mxu0 %v4031_v13  ;;  %v4066_v51 = vld [vmem:[#allocation6 + $0x178] sm:$0xff]  ;;  %v4073_v53 = vld [vmem:[#allocation6 + $0x1b0] sm:$0xff]  ;;  %v4072_v59 = vld [vmem:[#allocation6 + $0x1a8] sm:$0xff] }
  0x32   :  { %351 = vmatpush.bf16.msra.mxu1 %v4023_v14  ;;  %v210_v27 = vld [vmem:[#allocation2 + $0x1] sm:$0xff]  ;;  %v211_v41 = vld [vmem:[#allocation2 + $0x9] sm:$0xff]  ;;  %v4056_v60 = vld [vmem:[#allocation6 + $0x128] sm:$0xff] }
  0x33   :  { %441 = vmatpush.bf16.msra.mxu2 %v4039_v16  ;;  %v188_v28 = vld [vmem:[#allocation2] sm:$0xff]  ;;  %v4671_v37 = vld [vmem:[#allocation2 + $0x18] sm:$0xff]  ;;  %v189_v42 = vld [vmem:[#allocation2 + $0x8] sm:$0xff]  ;;  %v214_v48 = vpack.c.bf16 %v211_v41, %v210_v27 }
  0x34   :  { %535 = vmatpush.bf16.msra.mxu3 %v4047_v17  ;;  %v367_v29 = vld [vmem:[#allocation2 + $0x2] sm:$0xff]  ;;  %v4669_v36 = vld [vmem:[#allocation2 + $0x19] sm:$0xff]  ;;  %v368_v45 = vld [vmem:[#allocation2 + $0xa] sm:$0xff]  ;;  %v192_v49 = vpack.c.bf16 %v189_v42, %v188_v28 }
  0x35   :  { %285 = vmatpush.bf16.msra.mxu0 %v4030_v19  ;;  %936 = vst [vmem:[#allocation2] sm:$0x7] %v4528_v0  ;;  %v4673_v38 = vld [vmem:[#allocation2 + $0x1a] sm:$0xff]  ;;  %v371_v50 = vpack.c.bf16 %v368_v45, %v367_v29  ;;  %v4679_v55 = vld [vmem:[#allocation2 + $0xc] sm:$0xff]  ;;  %v370_v4 = vld [vmem:[#allocation2 + $0x22] sm:$0xff] }
  0x36   :  { %352 = vmatpush.bf16.msra.mxu1 %v4022_v20  ;;  %937 = vst [vmem:[#allocation2 + $0x18] sm:$0x7] %v4528_v0  ;;  %v4057_v54 = vld [vmem:[#allocation6 + $0x130] sm:$0xff]  ;;  %v4681_v56 = vld [vmem:[#allocation2 + $0xd] sm:$0xff]  ;;  %v4064_v61 = vld [vmem:[#allocation6 + $0x168] sm:$0xff]  ;;  %v372_v9 = vpack.c.bf16 %v370_v4, %v4673_v38 }
  0x37   :  { %442 = vmatpush.bf16.msra.mxu2 %v4038_v21  ;;  %v4683_v57 = vld [vmem:[#allocation2 + $0xe] sm:$0xff]  ;;  %v4065_v58 = vld [vmem:[#allocation6 + $0x170] sm:$0xff]  ;;  %v4068_v18 = vld [vmem:[#allocation6 + $0x188] sm:$0xff] }
  0x38   :  { %536 = vmatpush.bf16.msra.mxu3 %v4046_v22  ;;  %938 = vst [vmem:[#allocation2 + $0x13] sm:$0x7] %v4528_v0  ;;  %v4071_v62 = vld [vmem:[#allocation6 + $0x1a0] sm:$0xff]  ;;  %v213_v2 = vld [vmem:[#allocation2 + $0x21] sm:$0xff]  ;;  %v4052_v19 = vld [vmem:[#allocation6 + $0x108] sm:$0xff] }
  0x39   :  { %286 = vmatpush.bf16.msra.mxu0 %v4029_v25  ;;  %v4055_v63 = vld [vmem:[#allocation6 + $0x120] sm:$0xff]  ;;  %v191_v3 = vld [vmem:[#allocation2 + $0x20] sm:$0xff]  ;;  %v4070_v5 = vld [vmem:[#allocation6 + $0x198] sm:$0xff]  ;;  %v215_v7 = vpack.c.bf16 %v213_v2, %v4669_v36 }
  0x3a   :  { %353 = vmatpush.bf16.msra.mxu1 %v4021_v26  ;;  %v4063_v1 = vld [vmem:[#allocation6 + $0x160] sm:$0xff]  ;;  %v4054_v6 = vld [vmem:[#allocation6 + $0x118] sm:$0xff]  ;;  %v193_v8 = vpack.c.bf16 %v191_v3, %v4671_v37  ;;  %v4069_v12 = vld [vmem:[#allocation6 + $0x190] sm:$0xff] }
  0x3b   :  { %443 = vmatpush.bf16.msra.mxu2 %v4037_v30  ;;  %v4062_v10 = vld [vmem:[#allocation6 + $0x158] sm:$0xff]  ;;  %v4053_v13 = vld [vmem:[#allocation6 + $0x110] sm:$0xff]  ;;  %v4060_v20 = vld [vmem:[#allocation6 + $0x148] sm:$0xff] }
  0x3c   :  { %537 = vmatpush.bf16.msra.mxu3 %v4045_v31  ;;  %v558_v14 = vld [vmem:[#allocation2 + $0x24] sm:$0xff]  ;;  %v4067_v21 = vld [vmem:[#allocation6 + $0x180] sm:$0xff]  ;;  %v557_v30 = vld [vmem:[#allocation2 + $0x1c] sm:$0xff] }
  0x3d   :  { %287 = vmatpush.bf16.msra.mxu0 %v4028_v32  ;;  %v652_v15 = vld [vmem:[#allocation2 + $0x25] sm:$0xff]  ;;  %v4051_v22 = vld [vmem:[#allocation6 + $0x100] sm:$0xff]  ;;  %v651_v31 = vld [vmem:[#allocation2 + $0x1d] sm:$0xff] }
  0x3e   :  { %354 = vmatpush.bf16.msra.mxu1 %v4020_v33  ;;  %v746_v16 = vld [vmem:[#allocation2 + $0x26] sm:$0xff]  ;;  %v4059_v23 = vld [vmem:[#allocation6 + $0x140] sm:$0xff]  ;;  %v745_v32 = vld [vmem:[#allocation2 + $0x1e] sm:$0xff]  ;;  %v560_v33 = vpack.c.bf16 %v558_v14, %v557_v30 }
  0x3f   :  { %444 = vmatpush.bf16.msra.mxu2 %v4036_v34  ;;  %939 = vst [vmem:[#allocation2 + $0x2b] sm:$0x7] %v4528_v0  ;;  %v4061_v17 = vld [vmem:[#allocation6 + $0x150] sm:$0xff]  ;;  %v654_v34 = vpack.c.bf16 %v652_v15, %v651_v31  ;;  %v4082_v36 = vld [vmem:[#allocation9 + $0x38] sm:$0xff]  ;;  %v4080_v38 = vld [vmem:[#allocation9 + $0x28] sm:$0xff] }
  0x40   :  { %538 = vmatpush.bf16.msra.mxu3 %v4044_v35  ;;  %v555_v24 = vld [vmem:[#allocation2 + $0x4] sm:$0xff]  ;;  %v748_v35 = vpack.c.bf16 %v746_v16, %v745_v32  ;;  %v4076_v42 = vld [vmem:[#allocation9 + $0x8] sm:$0xff]  ;;  %v4087_v2 = vld [vmem:[#allocation8 + $0x20] sm:$0xff] }
  0x41   :  { %288 = vmatpush.bf16.msra.mxu0 %v4027_v39  ;;  %v649_v25 = vld [vmem:[#allocation2 + $0x5] sm:$0xff]  ;;  %v559_v27 = vpack.c.bf16 %v4679_v55, %v555_v24  ;;  %v4079_v39 = vld [vmem:[#allocation9 + $0x20] sm:$0xff] }
  0x42   :  { %355 = vmatpush.bf16.msra.mxu1 %v4019_v40  ;;  %v743_v26 = vld [vmem:[#allocation2 + $0x6] sm:$0xff]  ;;  %v653_v28 = vpack.c.bf16 %v4681_v56, %v649_v25  ;;  %v4111_v56 = vld [vmem:[#allocation8 + $0xe0] sm:$0xff] }
  0x43   :  { %445 = vmatpush.bf16.msra.mxu2 %v4035_v43  ;;  %v747_v29 = vpack.c.bf16 %v4683_v57, %v743_v26  ;;  %v4081_v37 = vld [vmem:[#allocation9 + $0x30] sm:$0xff]  ;;  %v4078_v40 = vld [vmem:[#allocation9 + $0x18] sm:$0xff]  ;;  %v4075_v43 = vld [vmem:[#allocation9] sm:$0xff] }
  0x44   :  { %539 = vmatpush.bf16.msra.mxu3 %v4043_v44  ;;  %289 = vmatmul.bf16.vlgmr.msra.gmra.mxu0 %v214_v48  ;;  %v4077_v41 = vld [vmem:[#allocation9 + $0x10] sm:$0xff]  ;;  %v4114_v44 = vld [vmem:[#allocation8 + $0xf8] sm:$0xff]  ;;  %v4104_v57 = vld [vmem:[#allocation8 + $0xa8] sm:$0xff] }
  0x45   :  { %626 = vmatpush.bf16.msrb.mxu0 %v4058_v47  ;;  %356 = vmatmul.bf16.vlgmr.msra.gmra.mxu1 %v192_v49  ;;  %v4113_v45 = vld [vmem:[#allocation8 + $0xf0] sm:$0xff]  ;;  %v4098_v47 = vld [vmem:[#allocation8 + $0x78] sm:$0xff]  ;;  %v4107_v14 = vld [vmem:[#allocation8 + $0xc0] sm:$0xff] }
  0x46   :  { %446 = vmatmul.bf16.vlgmr.msra.gmra.mxu2 %v371_v50  ;;  %720 = vmatpush.bf16.msrb.mxu1 %v4066_v51  ;;  %v4090_v48 = vld [vmem:[#allocation8 + $0x38] sm:$0xff]  ;;  %v4112_v51 = vld [vmem:[#allocation8 + $0xe8] sm:$0xff]  ;;  %v4089_v55 = vld [vmem:[#allocation8 + $0x30] sm:$0xff] }
  0x47   :  { %814 = vmatpush.bf16.msrb.mxu2 %v4074_v46  ;;  %540 = vmatmul.bf16.vlgmr.msra.gmra.mxu3 %v4677_v52  ;;  %v4106_v46 = vld [vmem:[#allocation8 + $0xb8] sm:$0xff]  ;;  %v4109_v3 = vld [vmem:[#allocation8 + $0xd0] sm:$0xff]  ;;  %v4091_v24 = vld [vmem:[#allocation8 + $0x40] sm:$0xff] }
  0x48   :  { %917 = vmatpush.bf16.msrb.mxu3 %v4082_v36  ;;  %v4083_v25 = vld [vmem:[#allocation8] sm:$0xff]  ;;  %v4138_v32 = vld [vmem:[#allocation8 + $0x1b8] sm:$0xff] }
  0x49   :  { %627 = vmatpush.bf16.msrb.mxu0 %v4057_v54  ;;  %v4097_v54 = vld [vmem:[#allocation8 + $0x70] sm:$0xff] }
  0x4a   :  { %721 = vmatpush.bf16.msrb.mxu1 %v4065_v58  ;;  %v4096_v58 = vld [vmem:[#allocation8 + $0x68] sm:$0xff] }
  0x4b   :  { %815 = vmatpush.bf16.msrb.mxu2 %v4073_v53  ;;  %v4105_v53 = vld [vmem:[#allocation8 + $0xb0] sm:$0xff] }
  0x4c   :  { %918 = vmatpush.bf16.msrb.mxu3 %v4081_v37 }
  0x4d   :  { %628 = vmatpush.bf16.msrb.mxu0 %v4056_v60 }
  0x4e   :  { %722 = vmatpush.bf16.msrb.mxu1 %v4064_v61 }
  0x4f   :  { %816 = vmatpush.bf16.msrb.mxu2 %v4072_v59  ;;  %v4088_v59 = vld [vmem:[#allocation8 + $0x28] sm:$0xff] }
  0x50   :  { %919 = vmatpush.bf16.msrb.mxu3 %v4080_v38  ;;  %v4137_v38 = vld [vmem:[#allocation8 + $0x1b0] sm:$0xff] }
  0x51   :  { %629 = vmatpush.bf16.msrb.mxu0 %v4055_v63  ;;  %v4103_v63 = vld [vmem:[#allocation8 + $0xa0] sm:$0xff] }
  0x52   :  { %723 = vmatpush.bf16.msrb.mxu1 %v4063_v1  ;;  %v4095_v1 = vld [vmem:[#allocation8 + $0x60] sm:$0xff] }
  0x53   :  { %817 = vmatpush.bf16.msrb.mxu2 %v4071_v62  ;;  %v4110_v62 = vld [vmem:[#allocation8 + $0xd8] sm:$0xff] }
  0x54   :  { %294 = vmatmul.bf16.gmra.mxu0 %v215_v7  ;;  %920 = vmatpush.bf16.msrb.mxu3 %v4079_v39  ;;  %v4086_v7 = vld [vmem:[#allocation8 + $0x18] sm:$0xff]  ;;  %v4121_v39 = vld [vmem:[#allocation8 + $0x130] sm:$0xff] }
  0x55   :  { %630 = vmatpush.bf16.msrb.mxu0 %v4054_v6  ;;  %361 = vmatmul.bf16.gmra.mxu1 %v193_v8  ;;  %v4094_v6 = vld [vmem:[#allocation8 + $0x58] sm:$0xff] }
  0x56   :  { %451 = vmatmul.bf16.gmra.mxu2 %v372_v9  ;;  %724 = vmatpush.bf16.msrb.mxu1 %v4062_v10  ;;  %v4108_v10 = vld [vmem:[#allocation8 + $0xc8] sm:$0xff] }
  0x57   :  { %818 = vmatpush.bf16.msrb.mxu2 %v4070_v5  ;;  %545 = vmatmul.bf16.gmra.mxu3 %v4692_v11  ;;  %v4102_v5 = vld [vmem:[#allocation8 + $0x98] sm:$0xff] }
  0x58   :  { %921 = vmatpush.bf16.msrb.mxu3 %v4078_v40  ;;  %v4129_v40 = vld [vmem:[#allocation8 + $0x170] sm:$0xff] }
  0x59   :  { %631 = vmatpush.bf16.msrb.mxu0 %v4053_v13  ;;  %v4085_v13 = vld [vmem:[#allocation8 + $0x10] sm:$0xff] }
  0x5a   :  { %725 = vmatpush.bf16.msrb.mxu1 %v4061_v17  ;;  %v4100_v17 = vld [vmem:[#allocation8 + $0x88] sm:$0xff] }
  0x5b   :  { %819 = vmatpush.bf16.msrb.mxu2 %v4069_v12  ;;  %v4093_v12 = vld [vmem:[#allocation8 + $0x50] sm:$0xff] }
  0x5c   :  { %922 = vmatpush.bf16.msrb.mxu3 %v4077_v41 }
  0x5d   :  { %632 = vmatpush.bf16.msrb.mxu0 %v4052_v19  ;;  %v4084_v19 = vld [vmem:[#allocation8 + $0x8] sm:$0xff] }
  0x5e   :  { %726 = vmatpush.bf16.msrb.mxu1 %v4060_v20 }
  0x5f   :  { %820 = vmatpush.bf16.msrb.mxu2 %v4068_v18  ;;  %v4092_v18 = vld [vmem:[#allocation8 + $0x48] sm:$0xff] }
  0x60   :  { %923 = vmatpush.bf16.msrb.mxu3 %v4076_v42  ;;  %v4713_v42 = vld [vmem:[%s4801_s2] ss:$0 sm:$0xff] }
  0x61   :  { %633 = vmatpush.bf16.msrb.mxu0 %v4051_v22 }
  0x62   :  { %727 = vmatpush.bf16.msrb.mxu1 %v4059_v23  ;;  %v4099_v23 = vld [vmem:[#allocation8 + $0x80] sm:$0xff] }
  0x63   :  { %821 = vmatpush.bf16.msrb.mxu2 %v4067_v21 }
  0x64   :  { %634 = vmatmul.bf16.vlgmr.msrb.gmra.mxu0 %v559_v27  ;;  %924 = vmatpush.bf16.msrb.mxu3 %v4075_v43  ;;  %v4136_v43 = vld [vmem:[#allocation8 + $0x1a8] sm:$0xff] }
  0x65   :  { %728 = vmatmul.bf16.vlgmr.msrb.gmra.mxu1 %v653_v28  ;;  %1037 = vmatpush.bf16.msra.mxu0 %v4098_v47 }
  0x66   :  { %822 = vmatmul.bf16.vlgmr.msrb.gmra.mxu2 %v747_v29  ;;  %1104 = vmatpush.bf16.msra.mxu1 %v4090_v48 }
  0x67   :  { %925 = vmatmul.bf16.vlgmr.msrb.gmra.mxu3 %v4677_v52  ;;  %1194 = vmatpush.bf16.msra.mxu2 %v4106_v46  ;;  %v4128_v46 = vld [vmem:[#allocation8 + $0x168] sm:$0xff] }
  0x68   :  { %1288 = vmatpush.bf16.msra.mxu3 %v4114_v44  ;;  %v4120_v44 = vld [vmem:[#allocation8 + $0x128] sm:$0xff] }
  0x69   :  { %1038 = vmatpush.bf16.msra.mxu0 %v4097_v54 }
  0x6a   :  { %1105 = vmatpush.bf16.msra.mxu1 %v4089_v55 }
  0x6b   :  { %1195 = vmatpush.bf16.msra.mxu2 %v4105_v53 }
  0x6c   :  { %1289 = vmatpush.bf16.msra.mxu3 %v4113_v45 }
  0x6d   :  { %1039 = vmatpush.bf16.msra.mxu0 %v4096_v58 }
  0x6e   :  { %1106 = vmatpush.bf16.msra.mxu1 %v4088_v59 }
  0x6f   :  { %1196 = vmatpush.bf16.msra.mxu2 %v4104_v57  ;;  %v4127_v57 = vld [vmem:[#allocation8 + $0x160] sm:$0xff] }
  0x70   :  { %1290 = vmatpush.bf16.msra.mxu3 %v4112_v51 }
  0x71   :  { %1040 = vmatpush.bf16.msra.mxu0 %v4095_v1 }
  0x72   :  { %1107 = vmatpush.bf16.msra.mxu1 %v4087_v2  ;;  %v4134_v2 = vld [vmem:[#allocation8 + $0x198] sm:$0xff] }
  0x73   :  { %1197 = vmatpush.bf16.msra.mxu2 %v4103_v63 }
  0x74   :  { %639 = vmatmul.bf16.gmra.mxu0 %v560_v33  ;;  %1291 = vmatpush.bf16.msra.mxu3 %v4111_v56  ;;  %v4122_v33 = vld [vmem:[#allocation8 + $0x138] sm:$0xff]  ;;  %v4135_v56 = vld [vmem:[#allocation8 + $0x1a0] sm:$0xff] }
  0x75   :  { %733 = vmatmul.bf16.gmra.mxu1 %v654_v34  ;;  %1041 = vmatpush.bf16.msra.mxu0 %v4094_v6  ;;  %v4130_v34 = vld [vmem:[#allocation8 + $0x178] sm:$0xff] }
  0x76   :  { %827 = vmatmul.bf16.gmra.mxu2 %v748_v35  ;;  %1108 = vmatpush.bf16.msra.mxu1 %v4086_v7 }
  0x77   :  { %930 = vmatmul.bf16.gmra.mxu3 %v4692_v11  ;;  %1198 = vmatpush.bf16.msra.mxu2 %v4102_v5  ;;  %v4101_v11 = vld [vmem:[#allocation8 + $0x90] sm:$0xff] }
  0x78   :  { %1292 = vmatpush.bf16.msra.mxu3 %v4110_v62 }
  0x79   :  { %1042 = vmatpush.bf16.msra.mxu0 %v4093_v12  ;;  %v4125_v12 = vld [vmem:[#allocation8 + $0x150] sm:$0xff] }
  0x7a   :  { %1109 = vmatpush.bf16.msra.mxu1 %v4085_v13 }
  0x7b   :  { %1199 = vmatpush.bf16.msra.mxu2 %v4101_v11 }
  0x7c   :  { %1293 = vmatpush.bf16.msra.mxu3 %v4109_v3  ;;  %v4118_v3 = vld [vmem:[#allocation8 + $0x118] sm:$0xff] }
  0x7d   :  { %1043 = vmatpush.bf16.msra.mxu0 %v4092_v18 }
  0x7e   :  { %1110 = vmatpush.bf16.msra.mxu1 %v4084_v19 }
  0x7f   :  { %1200 = vmatpush.bf16.msra.mxu2 %v4100_v17 }
  0x80   :  { %1294 = vmatpush.bf16.msra.mxu3 %v4108_v10  ;;  %v4117_v10 = vld [vmem:[#allocation8 + $0x110] sm:$0xff] }
  0x81   :  { %1044 = vmatpush.bf16.msra.mxu0 %v4091_v24  ;;  %v4124_v24 = vld [vmem:[#allocation8 + $0x148] sm:$0xff] }
  0x82   :  { %1111 = vmatpush.bf16.msra.mxu1 %v4083_v25 }
  0x83   :  { %1201 = vmatpush.bf16.msra.mxu2 %v4099_v23 }
  0x84   :  { %1295 = vmatpush.bf16.msra.mxu3 %v4107_v14 }
  0x85   :  { %1382 = vmatpush.bf16.msrb.mxu0 %v4122_v33 }
  0x86   :  { %1476 = vmatpush.bf16.msrb.mxu1 %v4130_v34 }
  0x87   :  { %1570 = vmatpush.bf16.msrb.mxu2 %v4138_v32 }
  0x89   :  { %1383 = vmatpush.bf16.msrb.mxu0 %v4121_v39 }
  0x8a   :  { %1477 = vmatpush.bf16.msrb.mxu1 %v4129_v40 }
  0x8b   :  { %1571 = vmatpush.bf16.msrb.mxu2 %v4137_v38 }
  0x8d   :  { %1384 = vmatpush.bf16.msrb.mxu0 %v4120_v44 }
  0x8e   :  { %1478 = vmatpush.bf16.msrb.mxu1 %v4128_v46 }
  0x8f   :  { %1572 = vmatpush.bf16.msrb.mxu2 %v4136_v43 }
  0x92   :  { %1479 = vmatpush.bf16.msrb.mxu1 %v4127_v57 }
  0x93   :  { %1573 = vmatpush.bf16.msrb.mxu2 %v4135_v56 }
  0x97   :  { %1574 = vmatpush.bf16.msrb.mxu2 %v4134_v2 }
  0xc1   :  { %v4700_v49 = vpop.f32.mrf.mxu0 }
  0xc2   :  { %v357_v50 = vpop.f32.mrf.mxu1 }
  0xc3   :  { %v358_v22 = vadd.f32 %v357_v50, %v4700_v49 }
  0xc9   :  { %v447_v52 = vpop.f32.mrf.mxu2  ;;  %v292_v60 = vpop.f32.mrf.mxu0 }
  0xca   :  { %v359_v61 = vpop.f32.mrf.mxu1  ;;  %v541_v15 = vpop.f32.mrf.mxu3  ;;  %v457_v26 = vadd.f32 %v447_v52, %v358_v22  ;;  %v4119_v52 = vld [vmem:[#allocation8 + $0x120] sm:$0xff] }
  0xcb   :  { %v360_v35 = vadd.f32 %v359_v61, %v292_v60  ;;  %1385 = vmatpush.bf16.msrb.mxu0 %v4119_v52 }
  0xcc   :  { %v551_v29 = vadd.f32 %v541_v15, %v457_v26  ;;  %v4132_v15 = vld [vmem:[#allocation8 + $0x188] sm:$0xff] }
  0xcf   :  { %1386 = vmatpush.bf16.msrb.mxu0 %v4118_v3 }
  0xd1   :  { %v449_v4 = vpop.f32.mrf.mxu2  ;;  %v4703_v8 = vpop.f32.mrf.mxu0 }
  0xd2   :  { %v362_v9 = vpop.f32.mrf.mxu1  ;;  %v543_v27 = vpop.f32.mrf.mxu3  ;;  %v458_v37 = vadd.f32 %v449_v4, %v360_v35  ;;  %v4126_v4 = vld [vmem:[#allocation8 + $0x158] sm:$0xff] }
  0xd3   :  { %v363_v51 = vadd.f32 %v362_v9, %v4703_v8  ;;  %v4133_v9 = vld [vmem:[#allocation8 + $0x190] sm:$0xff]  ;;  %1480 = vmatpush.bf16.msrb.mxu1 %v4126_v4  ;;  %1387 = vmatpush.bf16.msrb.mxu0 %v4117_v10 }
  0xd4   :  { %v552_v47 = vadd.f32 %v543_v27, %v458_v37  ;;  %1575 = vmatpush.bf16.msrb.mxu2 %v4133_v9 }
  0xd7   :  { %1481 = vmatpush.bf16.msrb.mxu1 %v4125_v12 }
  0xd8   :  { %1576 = vmatpush.bf16.msrb.mxu2 %v4132_v15  ;;  %v4146_v15 = vld [vmem:[#allocation11 + $0x38] sm:$0xff] }
  0xd9   :  { %v452_v16 = vpop.f32.mrf.mxu2  ;;  %v4705_v20 = vpop.f32.mrf.mxu0 }
  0xda   :  { %v4707_v21 = vpop.f32.mrf.mxu1  ;;  %v546_v53 = vpop.f32.mrf.mxu3  ;;  %v459_v58 = vadd.f32 %v452_v16, %v363_v51  ;;  %v4116_v16 = vld [vmem:[#allocation8 + $0x108] sm:$0xff] }
  0xdb   :  { %v365_v5 = vadd.f32 %v4707_v21, %v4705_v20  ;;  %1388 = vmatpush.bf16.msrb.mxu0 %v4116_v16  ;;  %1482 = vmatpush.bf16.msrb.mxu1 %v4124_v24  ;;  %v4162_v16 = vld [vmem:[#allocation11 + $0xb8] sm:$0xff]  ;;  %v4161_v24 = vld [vmem:[#allocation11 + $0xb0] sm:$0xff] }
  0xdc   :  { %v553_v62 = vadd.f32 %v546_v53, %v459_v58 }
  0xe1   :  { %v454_v28 = vpop.f32.mrf.mxu2  ;;  %v635_v30 = vpop.f32.mrf.mxu0 }
  0xe2   :  { %v729_v31 = vpop.f32.mrf.mxu1  ;;  %v645_v36 = vadd.f32 %v635_v30, %v551_v29  ;;  %v460_v11 = vadd.f32 %v454_v28, %v365_v5  ;;  %v548_v13 = vpop.f32.mrf.mxu3  ;;  %v4131_v29 = vld [vmem:[#allocation8 + $0x180] sm:$0xff] }
  0xe3   :  { %v4115_v30 = vld [vmem:[#allocation8 + $0x100] sm:$0xff]  ;;  %1577 = vmatpush.bf16.msrb.mxu2 %v4131_v29  ;;  %v4168_v29 = vld [vmem:[#allocation11 + $0xe8] sm:$0xff] }
  0xe4   :  { %v739_v41 = vadd.f32 %v729_v31, %v645_v36  ;;  %v554_v22 = vadd.f32 %v548_v13, %v460_v11  ;;  %v4123_v31 = vld [vmem:[#allocation8 + $0x140] sm:$0xff]  ;;  %1389 = vmatpush.bf16.msrb.mxu0 %v4115_v30 }
  0xe5   :  { %1483 = vmatpush.bf16.msrb.mxu1 %v4123_v31 }
  0xe9   :  { %v823_v45 = vpop.f32.mrf.mxu2  ;;  %v637_v49 = vpop.f32.mrf.mxu0 }
  0xea   :  { %v833_v48 = vadd.f32 %v823_v45, %v739_v41  ;;  %v731_v50 = vpop.f32.mrf.mxu1  ;;  %v646_v55 = vadd.f32 %v637_v49, %v552_v47  ;;  %v4726_v10 = vpop.f32.mrf.mxu3 }
  0xec   :  { %v841_v54 = vadd.f32 %v4713_v42, %v833_v48  ;;  %v740_v60 = vadd.f32 %v731_v50, %v646_v55 }
  0xee   :  { %v845_v59 = vmax.f32 %v841_v54, 0.0 }
  0xf0   :  { %940 = vst [vmem:[#allocation2 + $0x3] sm:$0xff] %v845_v59 }
  0xf1   :  { %v825_v61 = vpop.f32.mrf.mxu2  ;;  %v640_v1 = vpop.f32.mrf.mxu0 }
  0xf2   :  { %v834_v63 = vadd.f32 %v825_v61, %v740_v60  ;;  %v647_v7 = vadd.f32 %v640_v1, %v553_v62  ;;  %v734_v8 = vpop.f32.mrf.mxu1  ;;  %v4728_v11 = vpop.f32.mrf.mxu3 }
  0xf4   :  { %v842_v6 = vadd.f32 %v4713_v42, %v834_v63  ;;  %v741_v17 = vadd.f32 %v734_v8, %v647_v7 }
  0xf6   :  { %v846_v14 = vmax.f32 %v842_v6, 0.0 }
  0xf7   :  { %v966_v18 = vld [vmem:[#allocation2 + $0x1] sm:$0xff] }
  0xf8   :  { %941 = vst [vmem:[#allocation2 + $0xb] sm:$0xff] %v846_v14  ;;  %v944_v19 = vld [vmem:[#allocation2] sm:$0xff]  ;;  %v1221_v21 = vpack.c.bf16 %v846_v14, %v845_v59  ;;  %v4154_v14 = vld [vmem:[#allocation11 + $0x78] sm:$0xff] }
  0xf9   :  { %v1123_v20 = vld [vmem:[#allocation2 + $0x2] sm:$0xff]  ;;  %v828_v23 = vpop.f32.mrf.mxu2  ;;  %v642_v26 = vpop.f32.mrf.mxu0  ;;  %1707 = vmatpush.bf16.msrb.mxu3 %v4154_v14 }
  0xfa   :  { %1609 = vst [vmem:[#allocation2] sm:$0x7] %v4528_v0  ;;  %v835_v25 = vadd.f32 %v828_v23, %v741_v17  ;;  %1296 = vmatmul.bf16.vlgmr.msra.gmra.mxu3 %v1221_v21  ;;  %v648_v27 = vadd.f32 %v642_v26, %v554_v22  ;;  %v736_v33 = vpop.f32.mrf.mxu1  ;;  %v4170_v17 = vld [vmem:[#allocation11 + $0xf8] sm:$0xff]  ;;  %v4153_v22 = vld [vmem:[#allocation11 + $0x70] sm:$0xff]  ;;  %v4152_v26 = vld [vmem:[#allocation11 + $0x68] sm:$0xff] }
  0xfb   :  { %v4145_v23 = vld [vmem:[#allocation11 + $0x30] sm:$0xff] }
  0xfc   :  { %v843_v28 = vadd.f32 %v4713_v42, %v835_v25  ;;  %v742_v34 = vadd.f32 %v736_v33, %v648_v27  ;;  %v4169_v25 = vld [vmem:[#allocation11 + $0xf0] sm:$0xff]  ;;  %v4144_v27 = vld [vmem:[#allocation11 + $0x28] sm:$0xff] }
  0xfd   :  { %1708 = vmatpush.bf16.msrb.mxu3 %v4153_v22  ;;  %v4177_v14 = vld [vmem:[#allocation11 + $0x130] sm:$0xff] }
  0xfe   :  { %v847_v32 = vmax.f32 %v843_v28, 0.0  ;;  %v4160_v28 = vld [vmem:[#allocation11 + $0xa8] sm:$0xff] }
  0xff   :  { %v967_v35 = vld [vmem:[#allocation2 + $0x9] sm:$0xff] }
 0x100   :  { %v945_v36 = vld [vmem:[#allocation2 + $0x8] sm:$0xff]  ;;  %942 = vst [vmem:[#allocation2 + $0x1b] sm:$0xff] %v847_v32  ;;  %v970_v38 = vpack.c.bf16 %v967_v35, %v966_v18  ;;  %v4730_v18 = vpop.f32.mrf.mxu3  ;;  %v4143_v35 = vld [vmem:[#allocation11 + $0x20] sm:$0xff] }
 0x101   :  { %v1124_v37 = vld [vmem:[#allocation2 + $0xa] sm:$0xff]  ;;  %v948_v39 = vpack.c.bf16 %v945_v36, %v944_v19  ;;  %v830_v41 = vpop.f32.mrf.mxu2  ;;  %1709 = vmatpush.bf16.msrb.mxu3 %v4152_v26  ;;  %v4184_v26 = vld [vmem:[#allocation11 + $0x168] sm:$0xff] }
 0x102   :  { %v1127_v40 = vpack.c.bf16 %v1124_v37, %v1123_v20  ;;  %v1312_v43 = vld [vmem:[#allocation2 + $0xc] sm:$0xff]  ;;  %v836_v46 = vadd.f32 %v830_v41, %v742_v34  ;;  %1045 = vmatmul.bf16.vlgmr.msra.gmra.mxu0 %v970_v38 }
 0x103   :  { %v1406_v44 = vld [vmem:[#allocation2 + $0xd] sm:$0xff]  ;;  %1112 = vmatmul.bf16.vlgmr.msra.gmra.mxu1 %v948_v39  ;;  %v1405_v62 = vld [vmem:[#allocation2 + $0x5] sm:$0xff]  ;;  %1769 = vmatpush.bf16.msra.mxu0 %v4146_v15 }
 0x104   :  { %v1500_v45 = vld [vmem:[#allocation2 + $0xe] sm:$0xff]  ;;  %1202 = vmatmul.bf16.vlgmr.msra.gmra.mxu2 %v1127_v40  ;;  %v844_v47 = vadd.f32 %v4713_v42, %v836_v46  ;;  %v1311_v42 = vld [vmem:[#allocation2 + $0x4] sm:$0xff]  ;;  %v1409_v2 = vpack.c.bf16 %v1406_v44, %v1405_v62  ;;  %1853 = vmatpush.bf16.msra.mxu1 %v4162_v16 }
 0x105   :  { %1611 = vst [vmem:[#allocation2 + $0x13] sm:$0x7] %v4528_v0  ;;  %v1499_v63 = vld [vmem:[#allocation2 + $0x6] sm:$0xff]  ;;  %v1315_v1 = vpack.c.bf16 %v1312_v43, %v1311_v42  ;;  %1939 = vmatpush.bf16.msra.mxu2 %v4170_v17  ;;  %v4151_v34 = vld [vmem:[#allocation11 + $0x60] sm:$0xff] }
 0x106   :  { %v848_v48 = vmax.f32 %v844_v47, 0.0  ;;  %v1503_v3 = vpack.c.bf16 %v1500_v45, %v1499_v63  ;;  %v4159_v36 = vld [vmem:[#allocation11 + $0xa0] sm:$0xff]  ;;  %1710 = vmatpush.bf16.msrb.mxu3 %v4151_v34  ;;  %v4150_v38 = vld [vmem:[#allocation11 + $0x58] sm:$0xff]  ;;  %v4149_v47 = vld [vmem:[#allocation11 + $0x50] sm:$0xff] }
 0x107   :  { %v968_v49 = vld [vmem:[#allocation2 + $0x19] sm:$0xff]  ;;  %1770 = vmatpush.bf16.msra.mxu0 %v4145_v23  ;;  %v4167_v37 = vld [vmem:[#allocation11 + $0xe0] sm:$0xff]  ;;  %v4142_v39 = vld [vmem:[#allocation11 + $0x18] sm:$0xff] }
 0x108   :  { %943 = vst [vmem:[#allocation2 + $0x23] sm:$0xff] %v848_v48  ;;  %v946_v50 = vld [vmem:[#allocation2 + $0x18] sm:$0xff]  ;;  %v1222_v53 = vpack.c.bf16 %v848_v48, %v847_v32  ;;  %1854 = vmatpush.bf16.msra.mxu1 %v4161_v24  ;;  %v4736_v30 = vpop.f32.mrf.mxu3  ;;  %v4158_v40 = vld [vmem:[#allocation11 + $0x98] sm:$0xff]  ;;  %v4141_v48 = vld [vmem:[#allocation11 + $0x10] sm:$0xff] }
 0x109   :  { %v1125_v51 = vld [vmem:[#allocation2 + $0x1a] sm:$0xff]  ;;  %1940 = vmatpush.bf16.msra.mxu2 %v4169_v25  ;;  %v4166_v41 = vld [vmem:[#allocation11 + $0xd8] sm:$0xff]  ;;  %v4139_v42 = vld [vmem:[#allocation11] sm:$0xff] }
 0x10a   :  { %1610 = vst [vmem:[#allocation2 + $0x18] sm:$0x7] %v4528_v0  ;;  %1301 = vmatmul.bf16.gmra.mxu3 %v1222_v53  ;;  %v4155_v62 = vld [vmem:[#allocation11 + $0x80] sm:$0xff]  ;;  %v4185_v15 = vld [vmem:[#allocation11 + $0x170] sm:$0xff]  ;;  %v4176_v25 = vld [vmem:[#allocation11 + $0x128] sm:$0xff] }
 0x10b   :  { %1771 = vmatpush.bf16.msra.mxu0 %v4144_v27  ;;  %1711 = vmatpush.bf16.msrb.mxu3 %v4150_v38  ;;  %v4193_v16 = vld [vmem:[#allocation11 + $0x1b0] sm:$0xff]  ;;  %v4200_v34 = vld [vmem:[#allocation14 + $0x28] sm:$0xff]  ;;  %v4183_v38 = vld [vmem:[#allocation11 + $0x160] sm:$0xff] }
 0x10c   :  { %1855 = vmatpush.bf16.msra.mxu1 %v4160_v28 }
 0x10d   :  { %1941 = vmatpush.bf16.msra.mxu2 %v4168_v29 }
 0x10f   :  { %v969_v54 = vld [vmem:[#allocation2 + $0x21] sm:$0xff]  ;;  %1772 = vmatpush.bf16.msra.mxu0 %v4143_v35  ;;  %1712 = vmatpush.bf16.msrb.mxu3 %v4149_v47 }
 0x110   :  { %v947_v55 = vld [vmem:[#allocation2 + $0x20] sm:$0xff]  ;;  %v971_v52 = vpack.c.bf16 %v969_v54, %v968_v49  ;;  %1856 = vmatpush.bf16.msra.mxu1 %v4159_v36  ;;  %v4148_v54 = vld [vmem:[#allocation11 + $0x48] sm:$0xff] }
 0x111   :  { %v1126_v56 = vld [vmem:[#allocation2 + $0x22] sm:$0xff]  ;;  %v949_v57 = vpack.c.bf16 %v947_v55, %v946_v50  ;;  %1942 = vmatpush.bf16.msra.mxu2 %v4167_v37  ;;  %v4140_v55 = vld [vmem:[#allocation11 + $0x8] sm:$0xff] }
 0x112   :  { %v1128_v58 = vpack.c.bf16 %v1126_v56, %v1125_v51  ;;  %v1314_v59 = vld [vmem:[#allocation2 + $0x24] sm:$0xff]  ;;  %1050 = vmatmul.bf16.gmra.mxu0 %v971_v52  ;;  %v1313_v4 = vld [vmem:[#allocation2 + $0x1c] sm:$0xff] }
 0x113   :  { %v1408_v60 = vld [vmem:[#allocation2 + $0x25] sm:$0xff]  ;;  %1117 = vmatmul.bf16.gmra.mxu1 %v949_v57  ;;  %v1407_v5 = vld [vmem:[#allocation2 + $0x1d] sm:$0xff]  ;;  %v1316_v7 = vpack.c.bf16 %v1314_v59, %v1313_v4  ;;  %1773 = vmatpush.bf16.msra.mxu0 %v4142_v39 }
 0x114   :  { %v1502_v61 = vld [vmem:[#allocation2 + $0x26] sm:$0xff]  ;;  %1207 = vmatmul.bf16.gmra.mxu2 %v1128_v58  ;;  %v1501_v6 = vld [vmem:[#allocation2 + $0x1e] sm:$0xff]  ;;  %v1410_v8 = vpack.c.bf16 %v1408_v60, %v1407_v5  ;;  %1857 = vmatpush.bf16.msra.mxu1 %v4158_v40 }
 0x115   :  { %1612 = vst [vmem:[#allocation2 + $0x2b] sm:$0x7] %v4528_v0  ;;  %v1504_v9 = vpack.c.bf16 %v1502_v61, %v1501_v6  ;;  %1943 = vmatpush.bf16.msra.mxu2 %v4166_v41  ;;  %v4157_v49 = vld [vmem:[#allocation11 + $0x90] sm:$0xff]  ;;  %v4156_v56 = vld [vmem:[#allocation11 + $0x88] sm:$0xff]  ;;  %1713 = vmatpush.bf16.msrb.mxu3 %v4148_v54  ;;  %v4147_v61 = vld [vmem:[#allocation11 + $0x40] sm:$0xff] }
 0x116   :  { %v4165_v51 = vld [vmem:[#allocation11 + $0xd0] sm:$0xff]  ;;  %v4164_v52 = vld [vmem:[#allocation11 + $0xc8] sm:$0xff]  ;;  %v4186_v4 = vld [vmem:[#allocation11 + $0x178] sm:$0xff] }
 0x117   :  { %1774 = vmatpush.bf16.msra.mxu0 %v4141_v48  ;;  %v4194_v6 = vld [vmem:[#allocation11 + $0x1b8] sm:$0xff] }
 0x118   :  { %1858 = vmatpush.bf16.msra.mxu1 %v4157_v49  ;;  %v4182_v54 = vld [vmem:[#allocation11 + $0x158] sm:$0xff] }
 0x119   :  { %1944 = vmatpush.bf16.msra.mxu2 %v4165_v51  ;;  %1714 = vmatpush.bf16.msrb.mxu3 %v4147_v61 }
 0x11b   :  { %1775 = vmatpush.bf16.msra.mxu0 %v4140_v55  ;;  %v4190_v55 = vld [vmem:[#allocation11 + $0x198] sm:$0xff] }
 0x11c   :  { %1859 = vmatpush.bf16.msra.mxu1 %v4156_v56 }
 0x11d   :  { %1945 = vmatpush.bf16.msra.mxu2 %v4164_v52  ;;  %v4198_v52 = vld [vmem:[#allocation14 + $0x18] sm:$0xff] }
 0x11f   :  { %1776 = vmatpush.bf16.msra.mxu0 %v4139_v42 }
 0x120   :  { %1860 = vmatpush.bf16.msra.mxu1 %v4155_v62 }
 0x122   :  { %1390 = vmatmul.bf16.vlgmr.msrb.gmra.mxu0 %v1315_v1 }
 0x123   :  { %1484 = vmatmul.bf16.vlgmr.msrb.gmra.mxu1 %v1409_v2  ;;  %v4163_v2 = vld [vmem:[#allocation11 + $0xc0] sm:$0xff]  ;;  %2111 = vmatpush.bf16.msrb.mxu0 %v4186_v4  ;;  %v4180_v4 = vld [vmem:[#allocation11 + $0x148] sm:$0xff] }
 0x124   :  { %1578 = vmatmul.bf16.vlgmr.msrb.gmra.mxu2 %v1503_v3  ;;  %v4178_v3 = vld [vmem:[#allocation11 + $0x138] sm:$0xff]  ;;  %2197 = vmatpush.bf16.msrb.mxu1 %v4194_v6 }
 0x125   :  { %1946 = vmatpush.bf16.msra.mxu2 %v4163_v2  ;;  %2025 = vmatpush.bf16.msra.mxu3 %v4178_v3 }
 0x127   :  { %2112 = vmatpush.bf16.msrb.mxu0 %v4185_v15 }
 0x128   :  { %2198 = vmatpush.bf16.msrb.mxu1 %v4193_v16  ;;  %v4171_v16 = vld [vmem:[#allocation11 + $0x100] sm:$0xff] }
 0x129   :  { %2026 = vmatpush.bf16.msra.mxu3 %v4177_v14 }
 0x12b   :  { %2113 = vmatpush.bf16.msrb.mxu0 %v4184_v26 }
 0x12d   :  { %2027 = vmatpush.bf16.msra.mxu3 %v4176_v25 }
 0x12f   :  { %2114 = vmatpush.bf16.msrb.mxu0 %v4183_v38 }
 0x132   :  { %1395 = vmatmul.bf16.gmra.mxu0 %v1316_v7  ;;  %v4202_v7 = vld [vmem:[#allocation14 + $0x38] sm:$0xff] }
 0x133   :  { %1489 = vmatmul.bf16.gmra.mxu1 %v1410_v8  ;;  %2289 = vmatpush.bf16.msrb.mxu2 %v4202_v7 }
 0x134   :  { %1583 = vmatmul.bf16.gmra.mxu2 %v1504_v9  ;;  %v4755_v9 = vld [vmem:[%s4805_s6] ss:$0 sm:$0xff]  ;;  %2115 = vmatpush.bf16.msrb.mxu0 %v4182_v54 }
 0x135   :  { %v927_v23 = vadd.f32 %v4755_v9, %v4726_v10  ;;  %v4175_v10 = vld [vmem:[#allocation11 + $0x120] sm:$0xff]  ;;  %v4209_v54 = vld [vmem:[#allocation12 + $0x30] sm:$0xff] }
 0x136   :  { %2028 = vmatpush.bf16.msra.mxu3 %v4175_v10 }
 0x17d   :  { %v1297_v46 = vpop.f32.mrf.mxu3 }
 0x17f   :  { %v1046_v12 = vpop.f32.mrf.mxu0 }
 0x180   :  { %v1113_v13 = vpop.f32.mrf.mxu1 }
 0x181   :  { %v1114_v50 = vadd.f32 %v1113_v13, %v1046_v12  ;;  %v4760_v12 = vld [vmem:[%s4803_s4] ss:$0 sm:$0xff] }
 0x185   :  { %v1299_v5 = vpop.f32.mrf.mxu3 }
 0x187   :  { %v1203_v19 = vpop.f32.mrf.mxu2  ;;  %v4732_v20 = vpop.f32.mrf.mxu0 }
 0x188   :  { %v4734_v21 = vpop.f32.mrf.mxu1  ;;  %v1213_v53 = vadd.f32 %v1203_v19, %v1114_v50  ;;  %v4201_v19 = vld [vmem:[#allocation14 + $0x30] sm:$0xff] }
 0x189   :  { %v1116_v63 = vadd.f32 %v4734_v21, %v4732_v20  ;;  %2290 = vmatpush.bf16.msrb.mxu2 %v4201_v19 }
 0x18a   :  { %v1307_v58 = vadd.f32 %v1297_v46, %v1213_v53  ;;  %v4174_v53 = vld [vmem:[#allocation11 + $0x118] sm:$0xff] }
 0x18b   :  { %2029 = vmatpush.bf16.msra.mxu3 %v4174_v53  ;;  %v4217_v53 = vld [vmem:[#allocation12 + $0x70] sm:$0xff] }
 0x18d   :  { %v1302_v37 = vpop.f32.mrf.mxu3  ;;  %2291 = vmatpush.bf16.msrb.mxu2 %v4200_v34  ;;  %v934_v34 = vadd.f32 %v4755_v9, %v4736_v30 }
 0x18f   :  { %v1205_v31 = vpop.f32.mrf.mxu2  ;;  %v4738_v32 = vpop.f32.mrf.mxu0 }
 0x190   :  { %v4740_v33 = vpop.f32.mrf.mxu1  ;;  %v1214_v8 = vadd.f32 %v1205_v31, %v1116_v63  ;;  %v4192_v31 = vld [vmem:[#allocation11 + $0x1a8] sm:$0xff] }
 0x191   :  { %v1119_v27 = vadd.f32 %v4740_v33, %v4738_v32  ;;  %2199 = vmatpush.bf16.msrb.mxu1 %v4192_v31  ;;  %v4191_v32 = vld [vmem:[#allocation11 + $0x1a0] sm:$0xff] }
 0x192   :  { %v1308_v20 = vadd.f32 %v1299_v5, %v1214_v8  ;;  %v4199_v33 = vld [vmem:[#allocation14 + $0x20] sm:$0xff]  ;;  %v932_v5 = vadd.f32 %v4755_v9, %v4730_v18  ;;  %v4188_v8 = vld [vmem:[#allocation11 + $0x188] sm:$0xff] }
 0x193   :  { %2292 = vmatpush.bf16.msrb.mxu2 %v4199_v33 }
 0x195   :  { %2200 = vmatpush.bf16.msrb.mxu1 %v4191_v32  ;;  %v1304_v62 = vpop.f32.mrf.mxu3 }
 0x197   :  { %v4742_v43 = vpop.f32.mrf.mxu2  ;;  %v4744_v44 = vpop.f32.mrf.mxu0  ;;  %2293 = vmatpush.bf16.msrb.mxu2 %v4198_v52  ;;  %v4208_v52 = vld [vmem:[#allocation12 + $0x28] sm:$0xff] }
 0x198   :  { %v4746_v45 = vpop.f32.mrf.mxu1  ;;  %v1215_v35 = vadd.f32 %v4742_v43, %v1119_v27  ;;  %v929_v43 = vadd.f32 %v4755_v9, %v4728_v11  ;;  %v4173_v11 = vld [vmem:[#allocation11 + $0x110] sm:$0xff] }
 0x199   :  { %v1121_v49 = vadd.f32 %v4746_v45, %v4744_v44  ;;  %2201 = vmatpush.bf16.msrb.mxu1 %v4190_v55  ;;  %v4189_v44 = vld [vmem:[#allocation11 + $0x190] sm:$0xff]  ;;  %2030 = vmatpush.bf16.msra.mxu3 %v4173_v11  ;;  %v4215_v11 = vld [vmem:[#allocation12 + $0x60] sm:$0xff] }
 0x19a   :  { %v1309_v46 = vadd.f32 %v1302_v37, %v1215_v35  ;;  %v4197_v45 = vld [vmem:[#allocation14 + $0x10] sm:$0xff] }
 0x19b   :  { %2294 = vmatpush.bf16.msrb.mxu2 %v4197_v45  ;;  %v4225_v55 = vld [vmem:[#allocation12 + $0xb0] sm:$0xff]  ;;  %v4206_v45 = vld [vmem:[#allocation12 + $0x18] sm:$0xff] }
 0x19d   :  { %2202 = vmatpush.bf16.msrb.mxu1 %v4189_v44  ;;  %v4214_v44 = vld [vmem:[#allocation12 + $0x58] sm:$0xff] }
 0x19f   :  { %v4748_v57 = vpop.f32.mrf.mxu2  ;;  %v1391_v59 = vpop.f32.mrf.mxu0 }
 0x1a0   :  { %v1485_v60 = vpop.f32.mrf.mxu1  ;;  %v1401_v1 = vadd.f32 %v1391_v59, %v1307_v58  ;;  %v1216_v58 = vadd.f32 %v4748_v57, %v1121_v49  ;;  %v4172_v57 = vld [vmem:[#allocation11 + $0x108] sm:$0xff]  ;;  %v4218_v49 = vld [vmem:[#allocation12 + $0x78] sm:$0xff] }
 0x1a1   :  { %2031 = vmatpush.bf16.msra.mxu3 %v4172_v57  ;;  %2203 = vmatpush.bf16.msrb.mxu1 %v4188_v8  ;;  %v4230_v57 = vld [vmem:[#allocation12 + $0xd8] sm:$0xff] }
 0x1a2   :  { %v1495_v13 = vadd.f32 %v1485_v60, %v1401_v1  ;;  %v4181_v60 = vld [vmem:[#allocation11 + $0x150] sm:$0xff]  ;;  %v1310_v1 = vadd.f32 %v1304_v62, %v1216_v58  ;;  %v4224_v58 = vld [vmem:[#allocation12 + $0xa8] sm:$0xff]  ;;  %v4222_v62 = vld [vmem:[#allocation12 + $0x98] sm:$0xff] }
 0x1a3   :  { %2116 = vmatpush.bf16.msrb.mxu0 %v4181_v60  ;;  %v4207_v60 = vld [vmem:[#allocation12 + $0x20] sm:$0xff] }
 0x1a5   :  { %2032 = vmatpush.bf16.msra.mxu3 %v4171_v16 }
 0x1a7   :  { %v1579_v17 = vpop.f32.mrf.mxu2  ;;  %v1393_v22 = vpop.f32.mrf.mxu0  ;;  %2117 = vmatpush.bf16.msrb.mxu0 %v4180_v4  ;;  %v4212_v4 = vld [vmem:[#allocation12 + $0x48] sm:$0xff] }
 0x1a8   :  { %v1589_v21 = vadd.f32 %v1579_v17, %v1495_v13  ;;  %v1487_v24 = vpop.f32.mrf.mxu1  ;;  %v1402_v29 = vadd.f32 %v1393_v22, %v1308_v20  ;;  %v4196_v13 = vld [vmem:[#allocation14 + $0x8] sm:$0xff]  ;;  %v4179_v17 = vld [vmem:[#allocation11 + $0x140] sm:$0xff] }
 0x1a9   :  { %2295 = vmatpush.bf16.msrb.mxu2 %v4196_v13  ;;  %v4195_v22 = vld [vmem:[#allocation14] sm:$0xff] }
 0x1aa   :  { %v1597_v28 = vadd.f32 %v4760_v12, %v1589_v21  ;;  %v1496_v40 = vadd.f32 %v1487_v24, %v1402_v29  ;;  %v4187_v21 = vld [vmem:[#allocation11 + $0x180] sm:$0xff] }
 0x1ab   :  { %2118 = vmatpush.bf16.msrb.mxu0 %v4179_v17  ;;  %2204 = vmatpush.bf16.msrb.mxu1 %v4187_v21  ;;  %v4211_v13 = vld [vmem:[#allocation12 + $0x40] sm:$0xff]  ;;  %v4242_v17 = vld [vmem:[#allocation12 + $0x138] sm:$0xff]  ;;  %v4228_v21 = vld [vmem:[#allocation12 + $0xc8] sm:$0xff] }
 0x1ac   :  { %v1601_v36 = vadd.f32 %v1597_v28, %v927_v23 }
 0x1ad   :  { %2296 = vmatpush.bf16.msrb.mxu2 %v4195_v22 }
 0x1ae   :  { %v1605_v39 = vmax.f32 %v1601_v36, 0.0 }
 0x1af   :  { %v1581_v41 = vpop.f32.mrf.mxu2  ;;  %v1396_v48 = vpop.f32.mrf.mxu0 }
 0x1b0   :  { %1613 = vst [vmem:[#allocation2 + $0x3] sm:$0xff] %v1605_v39  ;;  %v1590_v47 = vadd.f32 %v1581_v41, %v1496_v40  ;;  %v1403_v51 = vadd.f32 %v1396_v48, %v1309_v46  ;;  %v1490_v56 = vpop.f32.mrf.mxu1 }
 0x1b2   :  { %v1598_v50 = vadd.f32 %v4760_v12, %v1590_v47  ;;  %v1497_v42 = vadd.f32 %v1490_v56, %v1403_v51  ;;  %v4226_v51 = vld [vmem:[#allocation12 + $0xb8] sm:$0xff] }
 0x1b3   :  { %v4234_v56 = vld [vmem:[#allocation12 + $0xf8] sm:$0xff] }
 0x1b4   :  { %v1602_v59 = vadd.f32 %v1598_v50, %v929_v43  ;;  %v4210_v50 = vld [vmem:[#allocation12 + $0x38] sm:$0xff] }
 0x1b6   :  { %v1606_v61 = vmax.f32 %v1602_v59, 0.0  ;;  %v4233_v59 = vld [vmem:[#allocation12 + $0xf0] sm:$0xff] }
 0x1b7   :  { %v1584_v63 = vpop.f32.mrf.mxu2  ;;  %v1398_v3 = vpop.f32.mrf.mxu0 }
 0x1b8   :  { %1614 = vst [vmem:[#allocation2 + $0xb] sm:$0xff] %v1606_v61  ;;  %v1591_v2 = vadd.f32 %v1584_v63, %v1497_v42  ;;  %v1404_v7 = vadd.f32 %v1398_v3, %v1310_v1  ;;  %v1492_v15 = vpop.f32.mrf.mxu1  ;;  %v4223_v61 = vld [vmem:[#allocation12 + $0xa0] sm:$0xff]  ;;  %v4232_v42 = vld [vmem:[#allocation12 + $0xe8] sm:$0xff]  ;;  %v4213_v1 = vld [vmem:[#allocation12 + $0x50] sm:$0xff] }
 0x1b9   :  { %v4231_v63 = vld [vmem:[#allocation12 + $0xe0] sm:$0xff]  ;;  %v4221_v3 = vld [vmem:[#allocation12 + $0x90] sm:$0xff] }
 0x1ba   :  { %v1599_v6 = vadd.f32 %v4760_v12, %v1591_v2  ;;  %v1498_v20 = vadd.f32 %v1492_v15, %v1404_v7  ;;  %v4205_v2 = vld [vmem:[#allocation12 + $0x10] sm:$0xff]  ;;  %v4219_v15 = vld [vmem:[#allocation12 + $0x80] sm:$0xff] }
 0x1bb   :  { %v4229_v7 = vld [vmem:[#allocation12 + $0xd0] sm:$0xff] }
 0x1bc   :  { %v1603_v14 = vadd.f32 %v1599_v6, %v932_v5  ;;  %v4204_v5 = vld [vmem:[#allocation12 + $0x8] sm:$0xff] }
 0x1bd   :  { %v4220_v6 = vld [vmem:[#allocation12 + $0x88] sm:$0xff] }
 0x1be   :  { %v1607_v19 = vmax.f32 %v1603_v14, 0.0  ;;  %v4203_v14 = vld [vmem:[#allocation12] sm:$0xff] }
 0x1bf   :  { %v1586_v18 = vpop.f32.mrf.mxu2  ;;  %v1638_v23 = vld [vmem:[#allocation2 + $0x1] ss:$2 sm:$0xff]  ;;  %v1617_v24 = vld [vmem:[#allocation2] ss:$2 sm:$0xff] }
 0x1c0   :  { %v1784_v25 = vld [vmem:[#allocation2 + $0x2] ss:$2 sm:$0xff]  ;;  %1615 = vst [vmem:[#allocation2 + $0x1b] sm:$0xff] %v1607_v19  ;;  %v1592_v26 = vadd.f32 %v1586_v18, %v1498_v20  ;;  %v1870_v27 = vld [vmem:[#allocation2 + $0x3] ss:$2 sm:$0xff] }
 0x1c1   :  { %v1956_v28 = vld [vmem:[#allocation2 + $0x4] ss:$2 sm:$0xff]  ;;  %2303 = vst [vmem:[#allocation2] sm:$0x7] %v4528_v0  ;;  %v2042_v29 = vld [vmem:[#allocation2 + $0x5] ss:$2 sm:$0xff] }
 0x1c2   :  { %v2128_v31 = vld [vmem:[#allocation2 + $0x6] ss:$2 sm:$0xff]  ;;  %v1600_v35 = vadd.f32 %v4760_v12, %v1592_v26 }
 0x1c3   :  { %2305 = vst [vmem:[#allocation2 + $0xb] sm:$0x7] %v4528_v0  ;;  %v4250_v19 = vld [vmem:[#allocation12 + $0x178] sm:$0xff]  ;;  %v4241_v18 = vld [vmem:[#allocation12 + $0x130] sm:$0xff]  ;;  %v4227_v26 = vld [vmem:[#allocation12 + $0xc0] sm:$0xff] }
 0x1c4   :  { %v1604_v36 = vadd.f32 %v1600_v35, %v934_v34  ;;  %v4258_v20 = vld [vmem:[#allocation12 + $0x1b8] sm:$0xff] }
 0x1c6   :  { %v1608_v37 = vmax.f32 %v1604_v36, 0.0  ;;  %v4239_v36 = vld [vmem:[#allocation12 + $0x120] sm:$0xff] }
 0x1c8   :  { %1616 = vst [vmem:[#allocation2 + $0x23] sm:$0xff] %v1608_v37  ;;  %v4247_v37 = vld [vmem:[#allocation12 + $0x160] sm:$0xff] }
 0x1cf   :  { %v1640_v10 = vld [vmem:[#allocation2 + $0x19] ss:$2 sm:$0xff]  ;;  %v1619_v38 = vld [vmem:[#allocation2 + $0x18] ss:$2 sm:$0xff] }
 0x1d0   :  { %v1786_v39 = vld [vmem:[#allocation2 + $0x1a] ss:$2 sm:$0xff]  ;;  %v1641_v40 = vpack.c.bf16 %v1640_v10, %v1638_v23  ;;  %v1620_v32 = vpack.c.bf16 %v1619_v38, %v1617_v24  ;;  %v1872_v41 = vld [vmem:[#allocation2 + $0x1b] ss:$2 sm:$0xff]  ;;  %v4255_v10 = vld [vmem:[#allocation12 + $0x1a0] sm:$0xff] }
 0x1d1   :  { %v1787_v33 = vpack.c.bf16 %v1786_v39, %v1784_v25  ;;  %2304 = vst [vmem:[#allocation2 + $0x18] sm:$0x7] %v4528_v0  ;;  %v1873_v46 = vpack.c.bf16 %v1872_v41, %v1870_v27  ;;  %v1958_v30 = vld [vmem:[#allocation2 + $0x1c] ss:$2 sm:$0xff]  ;;  %v2044_v9 = vld [vmem:[#allocation2 + $0x1d] ss:$2 sm:$0xff] }
 0x1d2   :  { %v2130_v12 = vld [vmem:[#allocation2 + $0x1e] ss:$2 sm:$0xff]  ;;  %1715 = vmatmul.bf16.vlgmr.msrb.gmra.mxu3 %v1641_v40  ;;  %1777 = vmatmul.bf16.vlgmr.msra.gmra.mxu0 %v1620_v32  ;;  %v1959_v47 = vpack.c.bf16 %v1958_v30, %v1956_v28  ;;  %v2045_v48 = vpack.c.bf16 %v2044_v9, %v2042_v29 }
 0x1d3   :  { %2306 = vst [vmem:[#allocation2 + $0x23] sm:$0x7] %v4528_v0  ;;  %1861 = vmatmul.bf16.vlgmr.msra.gmra.mxu1 %v1787_v33  ;;  %1947 = vmatmul.bf16.vlgmr.msra.gmra.mxu2 %v1873_v46  ;;  %v2131_v43 = vpack.c.bf16 %v2130_v12, %v2128_v31  ;;  %v4216_v0 = vld [vmem:[#allocation12 + $0x68] sm:$0xff]  ;;  %v4249_v23 = vld [vmem:[#allocation12 + $0x170] sm:$0xff]  ;;  %v4238_v40 = vld [vmem:[#allocation12 + $0x118] sm:$0xff] }
 0x1d4   :  { %2396 = vmatpush.bf16.msrb.mxu3 %v4218_v49  ;;  %2458 = vmatpush.bf16.msra.mxu0 %v4210_v50  ;;  %v4257_v24 = vld [vmem:[#allocation12 + $0x1b0] sm:$0xff]  ;;  %v4240_v25 = vld [vmem:[#allocation12 + $0x128] sm:$0xff]  ;;  %v4246_v32 = vld [vmem:[#allocation12 + $0x158] sm:$0xff] }
 0x1d5   :  { %2540 = vmatpush.bf16.msra.mxu1 %v4226_v51  ;;  %2624 = vmatpush.bf16.msra.mxu2 %v4234_v56  ;;  %v4248_v27 = vld [vmem:[#allocation12 + $0x168] sm:$0xff]  ;;  %v4254_v33 = vld [vmem:[#allocation12 + $0x198] sm:$0xff]  ;;  %v4237_v12 = vld [vmem:[#allocation12 + $0x110] sm:$0xff] }
 0x1d6   :  { %v4256_v28 = vld [vmem:[#allocation12 + $0x1a8] sm:$0xff] }
 0x1d7   :  { %v4244_v56 = vld [vmem:[#allocation12 + $0x148] sm:$0xff] }
 0x1d8   :  { %2397 = vmatpush.bf16.msrb.mxu3 %v4217_v53  ;;  %2459 = vmatpush.bf16.msra.mxu0 %v4209_v54  ;;  %v4284_v53 = vld [vmem:[%s4807_s8] ss:$0 sm:$0xff]  ;;  %v4236_v54 = vld [vmem:[#allocation12 + $0x108] sm:$0xff] }
 0x1d9   :  { %2541 = vmatpush.bf16.msra.mxu1 %v4225_v55  ;;  %2625 = vmatpush.bf16.msra.mxu2 %v4233_v59 }
 0x1dc   :  { %2398 = vmatpush.bf16.msrb.mxu3 %v4216_v0  ;;  %2460 = vmatpush.bf16.msra.mxu0 %v4208_v52  ;;  %v4252_v0 = vld [vmem:[#allocation12 + $0x188] sm:$0xff] }
 0x1dd   :  { %2542 = vmatpush.bf16.msra.mxu1 %v4224_v58  ;;  %2626 = vmatpush.bf16.msra.mxu2 %v4232_v42 }
 0x1e0   :  { %2399 = vmatpush.bf16.msrb.mxu3 %v4215_v11  ;;  %2461 = vmatpush.bf16.msra.mxu0 %v4207_v60  ;;  %v4235_v60 = vld [vmem:[#allocation12 + $0x100] sm:$0xff] }
 0x1e1   :  { %2543 = vmatpush.bf16.msra.mxu1 %v4223_v61  ;;  %2627 = vmatpush.bf16.msra.mxu2 %v4231_v63 }
 0x1e2   :  { %2033 = vmatmul.bf16.vlgmr.msra.gmra.mxu3 %v1959_v47  ;;  %2119 = vmatmul.bf16.vlgmr.msrb.gmra.mxu0 %v2045_v48  ;;  %v4245_v48 = vld [vmem:[#allocation12 + $0x150] sm:$0xff] }
 0x1e3   :  { %2205 = vmatmul.bf16.vlgmr.msrb.gmra.mxu1 %v2131_v43  ;;  %2297 = vmatmul.bf16.vlgmr.msrb.gmra.mxu2 %v1873_v46  ;;  %v4253_v43 = vld [vmem:[#allocation12 + $0x190] sm:$0xff] }
 0x1e4   :  { %2400 = vmatpush.bf16.msrb.mxu3 %v4214_v44  ;;  %2462 = vmatpush.bf16.msra.mxu0 %v4206_v45  ;;  %v4243_v44 = vld [vmem:[#allocation12 + $0x140] sm:$0xff] }
 0x1e5   :  { %2544 = vmatpush.bf16.msra.mxu1 %v4222_v62  ;;  %2628 = vmatpush.bf16.msra.mxu2 %v4230_v57  ;;  %v4251_v45 = vld [vmem:[#allocation12 + $0x180] sm:$0xff] }
 0x1e8   :  { %2401 = vmatpush.bf16.msrb.mxu3 %v4213_v1  ;;  %2463 = vmatpush.bf16.msra.mxu0 %v4205_v2 }
 0x1e9   :  { %2545 = vmatpush.bf16.msra.mxu1 %v4221_v3  ;;  %2629 = vmatpush.bf16.msra.mxu2 %v4229_v7 }
 0x1ec   :  { %2402 = vmatpush.bf16.msrb.mxu3 %v4212_v4  ;;  %2464 = vmatpush.bf16.msra.mxu0 %v4204_v5 }
 0x1ed   :  { %2546 = vmatpush.bf16.msra.mxu1 %v4220_v6  ;;  %2630 = vmatpush.bf16.msra.mxu2 %v4228_v21 }
 0x1f0   :  { %2403 = vmatpush.bf16.msrb.mxu3 %v4211_v13  ;;  %2465 = vmatpush.bf16.msra.mxu0 %v4203_v14 }
 0x1f1   :  { %2547 = vmatpush.bf16.msra.mxu1 %v4219_v15  ;;  %2631 = vmatpush.bf16.msra.mxu2 %v4227_v26 }
 0x1f4   :  { %2708 = vmatpush.bf16.msra.mxu3 %v4242_v17  ;;  %2792 = vmatpush.bf16.msrb.mxu0 %v4250_v19 }
 0x1f5   :  { %2876 = vmatpush.bf16.msrb.mxu1 %v4258_v20 }
 0x1f8   :  { %2709 = vmatpush.bf16.msra.mxu3 %v4241_v18  ;;  %2793 = vmatpush.bf16.msrb.mxu0 %v4249_v23 }
 0x1f9   :  { %2877 = vmatpush.bf16.msrb.mxu1 %v4257_v24 }
 0x1fc   :  { %2710 = vmatpush.bf16.msra.mxu3 %v4240_v25  ;;  %2794 = vmatpush.bf16.msrb.mxu0 %v4248_v27  ;;  %v4266_v27 = vld [vmem:[#allocation15 + $0x38] sm:$0xff] }
 0x1fd   :  { %2878 = vmatpush.bf16.msrb.mxu1 %v4256_v28  ;;  %2992 = vmatpush.bf16.msrb.mxu2 %v4266_v27  ;;  %v4287_v27 = vld [vmem:[%s4813_s14] ss:$0 sm:$0xff] }
 0x200   :  { %2711 = vmatpush.bf16.msra.mxu3 %v4239_v36  ;;  %2795 = vmatpush.bf16.msrb.mxu0 %v4247_v37  ;;  %v4264_v36 = vld [vmem:[#allocation15 + $0x28] sm:$0xff] }
 0x201   :  { %2879 = vmatpush.bf16.msrb.mxu1 %v4255_v10  ;;  %v4263_v10 = vld [vmem:[#allocation15 + $0x20] sm:$0xff] }
 0x204   :  { %2712 = vmatpush.bf16.msra.mxu3 %v4238_v40  ;;  %2796 = vmatpush.bf16.msrb.mxu0 %v4246_v32 }
 0x205   :  { %2880 = vmatpush.bf16.msrb.mxu1 %v4254_v33  ;;  %v4262_v33 = vld [vmem:[#allocation15 + $0x18] sm:$0xff] }
 0x208   :  { %2713 = vmatpush.bf16.msra.mxu3 %v4237_v12  ;;  %2797 = vmatpush.bf16.msrb.mxu0 %v4245_v48 }
 0x209   :  { %2881 = vmatpush.bf16.msrb.mxu1 %v4253_v43 }
 0x20c   :  { %2714 = vmatpush.bf16.msra.mxu3 %v4236_v54  ;;  %2798 = vmatpush.bf16.msrb.mxu0 %v4244_v56  ;;  %v4259_v56 = vld [vmem:[#allocation15] sm:$0xff] }
 0x20d   :  { %2882 = vmatpush.bf16.msrb.mxu1 %v4252_v0 }
 0x210   :  { %2715 = vmatpush.bf16.msra.mxu3 %v4235_v60  ;;  %2799 = vmatpush.bf16.msrb.mxu0 %v4243_v44 }
 0x211   :  { %2883 = vmatpush.bf16.msrb.mxu1 %v4251_v45 }
 0x24f   :  { %v1778_v8 = vpop.f32.mrf.mxu0 }
 0x250   :  { %v1862_v16 = vpop.f32.mrf.mxu1 }
 0x255   :  { %v1716_v22 = vpop.f32.mrf.mxu3 }
 0x256   :  { %v1779_v31 = vadd.f32 %v1778_v8, %v1716_v22  ;;  %v1948_v39 = vpop.f32.mrf.mxu2 }
 0x257   :  { %v1780_v29 = vpop.f32.mrf.mxu0 }
 0x258   :  { %v1864_v34 = vpop.f32.mrf.mxu1  ;;  %v1867_v38 = vadd.f32 %v1862_v16, %v1779_v31  ;;  %v4265_v31 = vld [vmem:[#allocation15 + $0x30] sm:$0xff] }
 0x259   :  { %2993 = vmatpush.bf16.msrb.mxu2 %v4265_v31 }
 0x25a   :  { %v1953_v41 = vadd.f32 %v1948_v39, %v1867_v38 }
 0x25d   :  { %v1718_v35 = vpop.f32.mrf.mxu3  ;;  %2994 = vmatpush.bf16.msrb.mxu2 %v4264_v36 }
 0x25e   :  { %v1781_v46 = vadd.f32 %v1780_v29, %v1718_v35  ;;  %v1950_v52 = vpop.f32.mrf.mxu2 }
 0x25f   :  { %v2120_v30 = vpop.f32.mrf.mxu0 }
 0x260   :  { %v2206_v49 = vpop.f32.mrf.mxu1  ;;  %v1868_v50 = vadd.f32 %v1864_v34, %v1781_v46 }
 0x261   :  { %2995 = vmatpush.bf16.msrb.mxu2 %v4263_v10 }
 0x262   :  { %v1954_v58 = vadd.f32 %v1950_v52, %v1868_v50 }
 0x265   :  { %v2034_v9 = vpop.f32.mrf.mxu3  ;;  %2996 = vmatpush.bf16.msrb.mxu2 %v4262_v33 }
 0x266   :  { %v2039_v47 = vadd.f32 %v2034_v9, %v1953_v41  ;;  %v2298_v28 = vpop.f32.mrf.mxu2 }
 0x267   :  { %v2122_v62 = vpop.f32.mrf.mxu0 }
 0x268   :  { %v2125_v51 = vadd.f32 %v2120_v30, %v2039_v47  ;;  %v2208_v1 = vpop.f32.mrf.mxu1  ;;  %v4261_v30 = vld [vmem:[#allocation15 + $0x10] sm:$0xff]  ;;  %v4260_v47 = vld [vmem:[#allocation15 + $0x8] sm:$0xff] }
 0x269   :  { %2997 = vmatpush.bf16.msrb.mxu2 %v4261_v30 }
 0x26a   :  { %v2211_v55 = vadd.f32 %v2206_v49, %v2125_v51  ;;  %v4285_v51 = vld [vmem:[%s4811_s12] ss:$0 sm:$0xff] }
 0x26c   :  { %v2217_v59 = vadd.f32 %v4284_v53, %v2211_v55  ;;  %v4286_v55 = vld [vmem:[%s4809_s10] ss:$0 sm:$0xff] }
 0x26d   :  { %v2036_v11 = vpop.f32.mrf.mxu3  ;;  %2998 = vmatpush.bf16.msrb.mxu2 %v4260_v47 }
 0x26e   :  { %v2219_v61 = vmax.f32 %v2217_v59, 0.0  ;;  %v2040_v42 = vadd.f32 %v2036_v11, %v1954_v58  ;;  %v2300_v37 = vpop.f32.mrf.mxu2  ;;  %v2299_v58 = vadd.f32 %v4285_v51, %v2298_v28 }
 0x270   :  { %2307 = vst [vmem:[#allocation2 + $0x3] sm:$0xff] %v2219_v61  ;;  %v2126_v63 = vadd.f32 %v2122_v62, %v2040_v42 }
 0x271   :  { %2999 = vmatpush.bf16.msrb.mxu2 %v4259_v56 }
 0x272   :  { %v2212_v2 = vadd.f32 %v2208_v1, %v2126_v63 }
 0x274   :  { %v2218_v3 = vadd.f32 %v4284_v53, %v2212_v2 }
 0x276   :  { %v2220_v57 = vmax.f32 %v2218_v3, 0.0  ;;  %v2301_v3 = vadd.f32 %v4285_v51, %v2300_v37 }
 0x277   :  { %v2328_v5 = vld [vmem:[#allocation2 + $0x1] sm:$0xff] }
 0x278   :  { %2308 = vst [vmem:[#allocation2 + $0x1b] sm:$0xff] %v2220_v57  ;;  %v2558_v4 = vpack.c.bf16 %v2220_v57, %v2219_v61  ;;  %v2309_v6 = vld [vmem:[#allocation2] sm:$0xff] }
 0x279   :  { %v2472_v7 = vld [vmem:[#allocation2 + $0x2] sm:$0xff] }
 0x27a   :  { %2632 = vmatmul.bf16.vlgmr.msra.gmra.mxu2 %v2558_v4  ;;  %v2640_v22 = vld [vmem:[#allocation2 + $0x4] sm:$0xff] }
 0x27b   :  { %v2724_v18 = vld [vmem:[#allocation2 + $0x5] sm:$0xff] }
 0x27c   :  { %v2808_v25 = vld [vmem:[#allocation2 + $0x6] sm:$0xff] }
 0x27f   :  { %v2329_v8 = vld [vmem:[#allocation2 + $0x19] sm:$0xff] }
 0x280   :  { %v2310_v13 = vld [vmem:[#allocation2 + $0x18] sm:$0xff]  ;;  %v2330_v15 = vpack.c.bf16 %v2329_v8, %v2328_v5 }
 0x281   :  { %v2473_v14 = vld [vmem:[#allocation2 + $0x1a] sm:$0xff]  ;;  %v2311_v16 = vpack.c.bf16 %v2310_v13, %v2309_v6 }
 0x282   :  { %v2474_v17 = vpack.c.bf16 %v2473_v14, %v2472_v7  ;;  %2404 = vmatmul.bf16.vlgmr.msrb.gmra.mxu3 %v2330_v15  ;;  %v2641_v19 = vld [vmem:[#allocation2 + $0x1c] sm:$0xff] }
 0x283   :  { %2466 = vmatmul.bf16.vlgmr.msra.gmra.mxu0 %v2311_v16  ;;  %v2725_v20 = vld [vmem:[#allocation2 + $0x1d] sm:$0xff]  ;;  %v2642_v23 = vpack.c.bf16 %v2641_v19, %v2640_v22 }
 0x284   :  { %2548 = vmatmul.bf16.vlgmr.msra.gmra.mxu1 %v2474_v17  ;;  %v2809_v21 = vld [vmem:[#allocation2 + $0x1e] sm:$0xff]  ;;  %v2726_v24 = vpack.c.bf16 %v2725_v20, %v2724_v18 }
 0x285   :  { %v2810_v26 = vpack.c.bf16 %v2809_v21, %v2808_v25 }
 0x292   :  { %2716 = vmatmul.bf16.vlgmr.msra.gmra.mxu3 %v2642_v23 }
 0x293   :  { %2800 = vmatmul.bf16.vlgmr.msrb.gmra.mxu0 %v2726_v24 }
 0x294   :  { %2884 = vmatmul.bf16.vlgmr.msrb.gmra.mxu1 %v2810_v26 }
 0x2fd   :  { %v2633_v46 = vpop.f32.mrf.mxu2 }
 0x300   :  { %v2467_v29 = vpop.f32.mrf.mxu0 }
 0x301   :  { %v2549_v34 = vpop.f32.mrf.mxu1 }
 0x305   :  { %v2405_v35 = vpop.f32.mrf.mxu3  ;;  %v2635_v52 = vpop.f32.mrf.mxu2 }
 0x306   :  { %v2468_v39 = vadd.f32 %v2467_v29, %v2405_v35 }
 0x308   :  { %v2469_v38 = vpop.f32.mrf.mxu0  ;;  %v2554_v41 = vadd.f32 %v2549_v34, %v2468_v39 }
 0x309   :  { %v2551_v40 = vpop.f32.mrf.mxu1 }
 0x30a   :  { %v2638_v9 = vadd.f32 %v2633_v46, %v2554_v41 }
 0x30d   :  { %v2407_v32 = vpop.f32.mrf.mxu3 }
 0x30e   :  { %v2470_v12 = vadd.f32 %v2469_v38, %v2407_v32 }
 0x310   :  { %v2801_v48 = vpop.f32.mrf.mxu0  ;;  %v2555_v53 = vadd.f32 %v2551_v40, %v2470_v12 }
 0x311   :  { %v2885_v50 = vpop.f32.mrf.mxu1 }
 0x312   :  { %v2639_v59 = vadd.f32 %v2635_v52, %v2555_v53 }
 0x315   :  { %v2717_v43 = vpop.f32.mrf.mxu3 }
 0x316   :  { %v2722_v49 = vadd.f32 %v2717_v43, %v2638_v9 }
 0x318   :  { %v2806_v54 = vadd.f32 %v2801_v48, %v2722_v49  ;;  %v2803_v44 = vpop.f32.mrf.mxu0 }
 0x319   :  { %v2887_v63 = vpop.f32.mrf.mxu1 }
 0x31a   :  { %v2890_v0 = vadd.f32 %v2885_v50, %v2806_v54 }
 0x31c   :  { %v2896_v11 = vadd.f32 %v4286_v55, %v2890_v0 }
 0x31d   :  { %v2719_v60 = vpop.f32.mrf.mxu3 }
 0x31e   :  { %v2898_v61 = vadd.f32 %v2896_v11, %v2299_v58  ;;  %v2723_v42 = vadd.f32 %v2719_v60, %v2639_v59 }
 0x320   :  { %v2900_v45 = vmax.f32 %v2898_v61, 0.0  ;;  %v2807_v62 = vadd.f32 %v2803_v44, %v2723_v42 }
 0x322   :  { %v2902_v1 = vrot.slane %v2900_v45, 4  ;;  %v2891_v2 = vadd.f32 %v2887_v63, %v2807_v62 }
 0x324   :  { %v2903_v57 = vmax.f32 %v2900_v45, %v2902_v1  ;;  %v2897_v4 = vadd.f32 %v4286_v55, %v2891_v2 }
 0x326   :  { %v2904_v5 = vrot.slane %v2903_v57, 2  ;;  %v2899_v6 = vadd.f32 %v2897_v4, %v2301_v3 }
 0x328   :  { %v2905_v7 = vmax.f32 %v2903_v57, %v2904_v5  ;;  %v2901_v8 = vmax.f32 %v2899_v6, 0.0 }
 0x32a   :  { %v2908_v13 = vrot.slane %v2901_v8, 4  ;;  %v2906_v14 = vrot.slane %v2905_v7, 1 }
 0x32c   :  { %v2909_v15 = vmax.f32 %v2901_v8, %v2908_v13  ;;  %v2907_v19 = vmax.f32 %v2905_v7, %v2906_v14 }
 0x32e   :  { %v2910_v16 = vrot.slane %v2909_v15, 2  ;;  %v2914_v22 = vpack.c.bf16 %v2907_v19, %v2907_v19 }
 0x330   :  { %v2911_v17 = vmax.f32 %v2909_v15, %v2910_v16  ;;  %v2938_v23 = vunpack.c.l.b16 %v2914_v22 }
 0x332   :  { %v2912_v20 = vrot.slane %v2911_v17, 1 }
 0x334   :  { %v2913_v21 = vmax.f32 %v2911_v17, %v2912_v20 }
 0x336   :  { %v2915_v18 = vpack.c.bf16 %v2913_v21, %v2913_v21 }
 0x338   :  { %v2939_v24 = vunpack.c.l.b16 %v2915_v18 }
 0x33a   :  { %v2941_v25 = vsel %vm2940_vm0, %v2939_v24, %v2938_v23 }
 0x33b   :  { %v2942_v26 = vpack.c.b16 %v2941_v25, %v2941_v25 }
 0x33d   :  { %3000 = vmatmul.bf16.vlgmr.msrb.gmra.mxu2 %v2942_v26 }
 0x3c0   :  { %v3001_v28 = vpop.f32.mrf.mxu2 }
 0x3c1   :  { %v3002_v29 = vadd.f32 %v4287_v27, %v3001_v28 }
 0x3c3   :  { %3005 = vst [vmem:[#allocation17] sm:$0x3] %v3002_v29 }
 0x3c4   :  { %3016 = dma.vmem_to_hbm [thread:$0]  %s3012_s1, 32, %s3014_s17, [#allocation5]  }
 0x3c8   :  { %v3003_v31 = vpop.f32.mrf.mxu2 }
 0x3c9   :  { %4514 = dma.done.wait [#allocation5], 32  }
 0x3ca   :  { %4515 = vsyncadd [#allocation5], 4294967264 }
 0x3cb   :  { %3021 = vsyncpa [#allocation4], 1 }
 0x3cc   :  { %3022 = vsyncpa [#allocation7], 1 }
 0x3cd   :  { %3023 = vsyncpa [#allocation10], 1 }
 0x3ce   :  { %3024 = vsyncpa [#allocation13], 1 }
 0x3cf   :  { %3025 = vsyncpa [#allocation16], 1 }
 0x3d0   :  { %3026 = vsyncpa [#allocation5], 1 }

</bundles_post_ra>
